<compile_context>
chip_gen: v6e
topology: v6e:2x2x1
jax: 0.10.0
libtpu: 0.0.40
codegen_flags: <defaults>
</compile_context>

<pallas_src>
import jax
import jax.numpy as jnp
from jax.experimental import pallas as pl
from jax.experimental.pallas import tpu as pltpu

# ----------------------------- configuration --------------------------------
PAD = 0          # C.PAD
D_RNN = 128      # RNN_layers(d_model, 128)
DELTA_3 = 1.2    # Predictor default when 'delta' not in opt


def _pick_time_chunk(L, B, D, H=D_RNN, budget_bytes=4 << 20):
    """Largest time-chunk TC dividing L whose working set fits a small VMEM
    budget, preferring TC*B to be a sublane multiple (8) for dense stores."""
    fallback = 1
    for tc in sorted((d for d in range(1, L + 1) if L % d == 0), reverse=True):
        rows = tc * B
        per_chunk = rows * (2 * D * 2      # x block, double-buffered, bf16
                            + 2 * D * 4    # out block, double-buffered, f32
                            + 4 * H * 4    # gx intermediate, f32
                            + H * 4        # hidden-chunk scratch, f32
                            + 8)           # mask block
        if per_chunk > budget_bytes:
            continue
        if rows % 8 == 0:
            return tc
        if fallback == 1:
            fallback = tc
    return fallback


# =========================== Pallas kernel #1 ================================
# Fused: gate pre-projection + serial LSTM recurrence + masked output
# projection, over one chunk of TC timesteps (rows = TC*B, time-major).
def _lstm_fused_kernel(x_ref, m_ref, wih_ref, whh_ref, bg_ref, wp_ref, bp_ref,
                       o_ref, h_scr, c_scr, hc_scr):
    # x_ref  : (TC*B, D)  bf16   chunk inputs, time-major flattened rows
    # m_ref  : (TC*B, 1)  f32    non-pad mask
    # wih_ref: (D, 4H)    bf16   input weight, pre-transposed, gates [i,f,o,g]
    # whh_ref: (H, 4H)    bf16   recurrent weight, pre-transposed, [i,f,o,g]
    # bg_ref : (1, 4H)    f32    combined gate bias, [i,f,o,g]
    # wp_ref : (H, D)     bf16   projection weight, pre-transposed
    # bp_ref : (1, D)     f32    projection bias
    # o_ref  : (TC*B, D)  f32    projected (and mask-zeroed) outputs
    # h_scr / c_scr : (B, H) f32 carried LSTM state
    # hc_scr : (TC*B, H)  f32    chunk hidden buffer for the dense epilogue
    @pl.when(pl.program_id(0) == 0)
    def _():
        h_scr[...] = jnp.zeros_like(h_scr)
        c_scr[...] = jnp.zeros_like(c_scr)

    H = whh_ref.shape[0]
    B = h_scr.shape[0]
    TC = x_ref.shape[0] // B
    whh = whh_ref[...]                     # hoist grid-invariant weight load

    # Fused gate pre-projection for the whole chunk: one (TC*B, D)x(D, 4H)
    # matmul with no dependence on h -> off the serial recurrence chain.
    gx = jnp.dot(x_ref[...], wih_ref[...],
                 preferred_element_type=jnp.float32) + bg_ref[...]

    for i in range(TC):                    # fully unrolled serial recurrence
        h = h_scr[...]                     # (B, H) f32 state
        c = c_scr[...]
        gates = gx[i * B:(i + 1) * B, :] + jnp.dot(
            h.astype(whh.dtype), whh, preferred_element_type=jnp.float32)
        # gate layout [i, f, o | g]: one contiguous sigmoid over 3H, one tanh
        sig = jax.nn.sigmoid(gates[:, :3 * H])
        i_g = sig[:, 0 * H:1 * H]
        f_g = sig[:, 1 * H:2 * H]
        o_g = sig[:, 2 * H:3 * H]
        g_g = jnp.tanh(gates[:, 3 * H:])
        c_new = f_g * c + i_g * g_g
        h_new = o_g * jnp.tanh(c_new)
        c_scr[...] = c_new
        h_scr[...] = h_new
        hc_scr[i * B:(i + 1) * B, :] = h_new

    # Fused masked projection epilogue (pad_packed_sequence zero-pads the LSTM
    # output before the Linear, so mask h, then project): one dense store.
    hm = hc_scr[...] * m_ref[...]
    o_ref[...] = (jnp.dot(hm.astype(wp_ref.dtype), wp_ref[...],
                          preferred_element_type=jnp.float32)
                  + bp_ref[...]).astype(o_ref.dtype)


def rnn_layers_forward(enc_output, non_pad_mask, params):
    """RNN_layers.forward: LSTM + projection. enc_output: (B, L, D) f32."""
    B, L, D = enc_output.shape
    H = D_RNN

    # Reorder PyTorch gate layout [i, f, g, o] -> [i, f, o, g] so sigmoids are
    # contiguous; pre-transpose + cast matmul weights to bf16 (once, outside).
    def reorder_rows(w):                                   # (4H, ...) rows
        return jnp.concatenate([w[:2 * H], w[3 * H:], w[2 * H:3 * H]], axis=0)

    w_ih_t = reorder_rows(params["w_ih"]).T.astype(jnp.bfloat16)   # (D, 4H)
    w_hh_t = reorder_rows(params["w_hh"]).T.astype(jnp.bfloat16)   # (H, 4H)
    b_g = jnp.concatenate([params["b_gates"][:, :2 * H],
                           params["b_gates"][:, 3 * H:],
                           params["b_gates"][:, 2 * H:3 * H]], axis=1)
    w_proj_t = params["w_proj"].T.astype(jnp.bfloat16)             # (H, D)

    # Time-major, batch-flattened rows (row = t*B + b) so every kernel matmul
    # and store works on >=8 dense sublanes.
    x_rows = jnp.transpose(enc_output, (1, 0, 2)).reshape(L * B, D)
    x_rows = x_rows.astype(jnp.bfloat16)
    m_rows = jnp.transpose(non_pad_mask, (1, 0, 2)).reshape(L * B, 1)
    m_rows = m_rows.astype(jnp.float32)

    TC = _pick_time_chunk(L, B, D)
    R = TC * B

    # Advisory cost so XLA schedules surrounding ops around the serial kernel.
    flops = L * B * (2 * D * 4 * H + 2 * H * 4 * H + 2 * H * D + 10 * H)
    transcendentals = L * B * 5 * H
    bytes_accessed = (L * B * D * 2 + L * B * 4 + L * B * D * 4
                      + (D * 4 * H + H * 4 * H + H * D) * 2 + (4 * H + D) * 4)
    cost = pl.CostEstimate(flops=int(flops),
                           transcendentals=int(transcendentals),
                           bytes_accessed=int(bytes_accessed))

    out_rows = pl.pallas_call(
        _lstm_fused_kernel,
        out_shape=jax.ShapeDtypeStruct((L * B, D), jnp.float32),
        grid_spec=pltpu.PrefetchScalarGridSpec(
            num_scalar_prefetch=0,
            grid=(L // TC,),
            in_specs=[
                pl.BlockSpec((R, D), lambda t: (t, 0)),        # x chunk
                pl.BlockSpec((R, 1), lambda t: (t, 0)),        # mask chunk
                pl.BlockSpec((D, 4 * H), lambda t: (0, 0)),    # W_ih^T
                pl.BlockSpec((H, 4 * H), lambda t: (0, 0)),    # W_hh^T
                pl.BlockSpec((1, 4 * H), lambda t: (0, 0)),    # gate bias
                pl.BlockSpec((H, D), lambda t: (0, 0)),        # W_proj^T
                pl.BlockSpec((1, D), lambda t: (0, 0)),        # b_proj
            ],
            out_specs=pl.BlockSpec((R, D), lambda t: (t, 0)),
            scratch_shapes=[pltpu.VMEM((B, H), jnp.float32),   # h state
                            pltpu.VMEM((B, H), jnp.float32),   # c state
                            pltpu.VMEM((R, H), jnp.float32)],  # chunk hidden
        ),
        compiler_params=pltpu.CompilerParams(
            dimension_semantics=("arbitrary",)),
        cost_estimate=cost,
    )(x_rows, m_rows, w_ih_t, w_hh_t, b_g, w_proj_t, params["b_proj"])

    return jnp.transpose(out_rows.reshape(L, B, D), (1, 0, 2))     # (B, L, D)


# =========================== Pallas kernel #2 ================================
# Predictor: stacked matmul against the (zero-padded-to-128-lanes) embedding
# table, bias-linear, rsqrt L2-normalize, weighted sum, tanh.
def _predictor_kernel(sg_ref, gra2_ref, embT_ref, wl_ref, bl_ref, out_ref):
    B = gra2_ref.shape[0]

    def l2norm(x):   # F.normalize(p=2, dim=-1, eps=1e-5): x / max(||x||, eps)
        ss = jnp.sum(x * x, axis=-1, keepdims=True)
        return x * jax.lax.rsqrt(jnp.maximum(ss, 1e-10))

    both = jnp.dot(sg_ref[...], embT_ref[...],
                   preferred_element_type=jnp.float32)             # (2B, NTp)
    out1 = l2norm(both[:B])                                        # seq rep
    out2 = l2norm(both[B:])                                        # dataset branch
    out3 = l2norm(jnp.dot(gra2_ref[...], wl_ref[...],
                          preferred_element_type=jnp.float32) + bl_ref[...])
    out_ref[...] = jnp.tanh(out1 + out2 + out3 * DELTA_3)


def predictor_forward(user_seq_rep, embeddings, user_gra_rep, user_gra2_rep,
                      params):
    B, D = user_seq_rep.shape
    NT = embeddings.shape[0] - 1                       # num_types (drop PAD col)
    NT_pad = ((NT + 127) // 128) * 128                 # lane-dense output width

    # Zero-pad the NT axis: padded columns give 0 products / 0 bias, so they
    # don't perturb the L2 norms and are sliced off after the kernel.
    emb_t = jnp.pad(embeddings.T[:, 1:].astype(jnp.bfloat16),
                    ((0, 0), (0, NT_pad - NT)))                    # (D, NTp)
    w_lin_t = jnp.pad(params["pred_w"].T.astype(jnp.bfloat16),
                      ((0, 0), (0, NT_pad - NT)))                  # (D, NTp)
    b_lin = jnp.pad(params["pred_b"], ((0, 0), (0, NT_pad - NT)))  # (1, NTp)

    # Stack the two reps so their matmuls against emb_t become one MXU push.
    sg = jnp.concatenate([user_seq_rep, user_gra_rep],
                         axis=0).astype(jnp.bfloat16)              # (2B, D)

    # TODO(synk): for very large catalogs (NT >> VMEM), tile NT on a
    # 'parallel' grid axis with a two-pass sum-of-squares; unneeded here.
    out_pad = pl.pallas_call(
        _predictor_kernel,
        out_shape=jax.ShapeDtypeStruct((B, NT_pad), jnp.float32),
        grid=(1,),
        in_specs=[
            pl.BlockSpec((2 * B, D), lambda i: (0, 0)),
            pl.BlockSpec((B, D), lambda i: (0, 0)),
            pl.BlockSpec((D, NT_pad), lambda i: (0, 0)),
            pl.BlockSpec((D, NT_pad), lambda i: (0, 0)),
            pl.BlockSpec((1, NT_pad), lambda i: (0, 0)),
        ],
        out_specs=pl.BlockSpec((B, NT_pad), lambda i: (0, 0)),
        compiler_params=pltpu.CompilerParams(
            dimension_semantics=("arbitrary",)),
    )(sg, user_gra2_rep.astype(jnp.bfloat16), emb_t, w_lin_t, b_lin)

    return out_pad[:, :NT]


# =============================== Model glue ==================================
def init_params(key, num_types, d_model):
    ks = jax.random.split(key, 8)
    H = D_RNN
    emb = 0.1 * jax.random.normal(ks[0], (num_types + 1, d_model), jnp.float32)
    emb = emb.at[PAD].set(0.0)                          # padding_idx=C.PAD
    return {
        "emb": emb,
        # LSTM(d_model, 128): weight_ih (4H,D), weight_hh (4H,H), biases
        # (PyTorch gate layout [i, f, g, o])
        "w_ih": 0.1 * jax.random.normal(ks[1], (4 * H, d_model), jnp.float32),
        "w_hh": 0.1 * jax.random.normal(ks[2], (4 * H, H), jnp.float32),
        "b_gates": 0.1 * jax.random.normal(ks[3], (1, 4 * H), jnp.float32),
        # projection Linear(128, d_model)
        "w_proj": 0.1 * jax.random.normal(ks[4], (d_model, H), jnp.float32),
        "b_proj": 0.1 * jax.random.normal(ks[5], (1, d_model), jnp.float32),
        # Predictor.linear = Linear(d_model, C.ITEM_NUMBER == num_types)
        "pred_w": 0.1 * jax.random.normal(ks[6], (num_types, d_model),
                                          jnp.float32),
        "pred_b": 0.1 * jax.random.normal(ks[7], (1, num_types), jnp.float32),
    }


@jax.jit
def model_forward(params, user_id, event_type, adj_matrix, cor_matrix):
    del user_id, adj_matrix, cor_matrix
    # TODO(synk): the local_cor gather and HGC branch feed only the undefined
    # HGCEncoder in the reference; they are replaced by identity placeholders.
    non_pad_mask = (event_type != PAD).astype(jnp.float32)[..., None]  # (B,L,1)
    enc_output = jnp.take(params["emb"], event_type, axis=0) * non_pad_mask
    candidates = params["emb"]

    # C.ENCODER == 'NHP' branch
    attn_output = rnn_layers_forward(enc_output, non_pad_mask, params)

    correlation_output = enc_output                 # placeholder (HGCEncoder)
    hgc_outputs = enc_output.mean(axis=1)           # placeholder

    user_seq_rep = attn_output.mean(axis=1)         # (B, D)
    user_gra_rep = correlation_output.mean(axis=1)  # (B, D)
    user_gra2_rep = hgc_outputs                     # (B, D)

    prediction = predictor_forward(user_seq_rep, candidates,
                                   user_gra_rep, user_gra2_rep, params)
    return attn_output, prediction


# ================================ run ========================================
if __name__ == "__main__":
    B, L, d_model, num_types = 2, 8, 32, 12

    key = jax.random.PRNGKey(0)
    k_par, k_evt, k_adj, k_cor = jax.random.split(key, 4)
    params = init_params(k_par, num_types, d_model)

    # event types in [1, num_types]; pad the tail of sequence 1 (end padding,
    # matching pack_padded/pad_packed semantics).
    event_type = jax.random.randint(k_evt, (B, L), 1, num_types + 1,
                                    dtype=jnp.int32)
    event_type = event_type.at[1, 6:].set(PAD)
    user_id = jnp.arange(B, dtype=jnp.int32)
    adj_matrix = jax.random.uniform(k_adj, (num_types, num_types), jnp.float32)
    cor_matrix = jax.random.uniform(k_cor, (num_types, num_types), jnp.float32)

    attn_output, prediction = model_forward(params, user_id, event_type,
                                            adj_matrix, cor_matrix)
    jax.block_until_ready((attn_output, prediction))

    assert attn_output.shape == (B, L, d_model)
    assert prediction.shape == (B, num_types)
    assert bool(jnp.all(jnp.isfinite(attn_output)))
    assert bool(jnp.all(jnp.isfinite(prediction)))
    print("KERNEL_OK")
</pallas_src>

<mosaic_0001>
module attributes {stable_mosaic.version = 11 : i64} {
  func.func @_lstm_fused_kernel(%arg0: i32, %arg1: memref<16x32xbf16, #tpu.memory_space<vmem>>, %arg2: memref<16x1xf32, #tpu.memory_space<vmem>>, %arg3: memref<32x512xbf16, #tpu.memory_space<vmem>>, %arg4: memref<128x512xbf16, #tpu.memory_space<vmem>>, %arg5: memref<1x512xf32, #tpu.memory_space<vmem>>, %arg6: memref<128x32xbf16, #tpu.memory_space<vmem>>, %arg7: memref<1x32xf32, #tpu.memory_space<vmem>>, %arg8: memref<16x32xf32, #tpu.memory_space<vmem>>, %arg9: memref<2x128xf32, #tpu.memory_space<vmem>>, %arg10: memref<2x128xf32, #tpu.memory_space<vmem>>, %arg11: memref<16x128xf32, #tpu.memory_space<vmem>>) attributes {dimension_semantics = [#tpu.dimension_semantics<arbitrary>], iteration_bounds = array<i64: 1>, scalar_prefetch = 0 : i64, scratch_operands = 3 : i64, tpu.core_type = #tpu.core_type<tc>, window_params = [{transform_indices = @transform_0, window_bounds = array<i64: 16, 32>}, {transform_indices = @transform_1, window_bounds = array<i64: 16, 1>}, {pipeline_mode = #tpu.pipeline_mode<synchronous>, transform_indices = @transform_2, window_bounds = array<i64: 32, 512>}, {pipeline_mode = #tpu.pipeline_mode<synchronous>, transform_indices = @transform_3, window_bounds = array<i64: 128, 512>}, {pipeline_mode = #tpu.pipeline_mode<synchronous>, transform_indices = @transform_4, window_bounds = array<i64: 1, 512>}, {pipeline_mode = #tpu.pipeline_mode<synchronous>, transform_indices = @transform_5, window_bounds = array<i64: 128, 32>}, {pipeline_mode = #tpu.pipeline_mode<synchronous>, transform_indices = @transform_6, window_bounds = array<i64: 1, 32>}, {transform_indices = @transform_7, window_bounds = array<i64: 16, 32>}]} {
    %c0_i32 = arith.constant 0 : i32
    %0 = arith.cmpi eq, %arg0, %c0_i32 : i32
    %1 = arith.extui %0 : i1 to i32
    %c0_i32_0 = arith.constant 0 : i32
    %2 = arith.cmpi ne, %1, %c0_i32_0 : i32
    scf.if %2 {
      %cst_108 = arith.constant 0.000000e+00 : f32
      %221 = vector.broadcast %cst_108 : f32 to vector<2x128xf32>
      %c0_109 = arith.constant 0 : index
      %c0_110 = arith.constant 0 : index
      %222 = vector.load %arg9[%c0_109, %c0_110] : memref<2x128xf32, #tpu.memory_space<vmem>>, vector<2x128xf32>
      tpu.vector_store %arg9[%c0_109, %c0_110], %221 {strides = array<i32>} : memref<2x128xf32, #tpu.memory_space<vmem>>, vector<2x128xf32>,
      %cst_111 = arith.constant 0.000000e+00 : f32
      %223 = vector.broadcast %cst_111 : f32 to vector<2x128xf32>
      %c0_112 = arith.constant 0 : index
      %c0_113 = arith.constant 0 : index
      %224 = vector.load %arg10[%c0_112, %c0_113] : memref<2x128xf32, #tpu.memory_space<vmem>>, vector<2x128xf32>
      tpu.vector_store %arg10[%c0_112, %c0_113], %223 {strides = array<i32>} : memref<2x128xf32, #tpu.memory_space<vmem>>, vector<2x128xf32>,
    } else {
    }
    %c0 = arith.constant 0 : index
    %c0_1 = arith.constant 0 : index
    %3 = vector.load %arg4[%c0, %c0_1] : memref<128x512xbf16, #tpu.memory_space<vmem>>, vector<128x512xbf16>
    %c0_2 = arith.constant 0 : index
    %c0_3 = arith.constant 0 : index
    %4 = vector.load %arg1[%c0_2, %c0_3] : memref<16x32xbf16, #tpu.memory_space<vmem>>, vector<16x32xbf16>
    %c0_4 = arith.constant 0 : index
    %c0_5 = arith.constant 0 : index
    %5 = vector.load %arg3[%c0_4, %c0_5] : memref<32x512xbf16, #tpu.memory_space<vmem>>, vector<32x512xbf16>
    %cst = arith.constant dense<0.000000e+00> : vector<16x512xf32>
    %6 = tpu.matmul %4, %5, %cst {dimension_numbers = #tpu.dot_dimension_numbers<[1], [0], [0], [1], [0, 0, 1, 1], [], []>} : vector<16x32xbf16>, vector<32x512xbf16>, vector<16x512xf32> -> vector<16x512xf32>
    %c0_6 = arith.constant 0 : index
    %c0_7 = arith.constant 0 : index
    %7 = vector.load %arg5[%c0_6, %c0_7] : memref<1x512xf32, #tpu.memory_space<vmem>>, vector<1x512xf32>
    %8 = vector.broadcast %7 : vector<1x512xf32> to vector<16x512xf32>
    %9 = arith.addf %6, %8 : vector<16x512xf32>
    %c0_8 = arith.constant 0 : index
    %c0_9 = arith.constant 0 : index
    %10 = vector.load %arg9[%c0_8, %c0_9] : memref<2x128xf32, #tpu.memory_space<vmem>>, vector<2x128xf32>
    %c0_10 = arith.constant 0 : index
    %c0_11 = arith.constant 0 : index
    %11 = vector.load %arg10[%c0_10, %c0_11] : memref<2x128xf32, #tpu.memory_space<vmem>>, vector<2x128xf32>
    %12 = vector.extract_strided_slice %9 {offsets = [0, 0], sizes = [2, 512], strides = [1, 1]} : vector<16x512xf32> to vector<2x512xf32>
    %13 = arith.truncf %10 : vector<2x128xf32> to vector<2x128xbf16>
    %cst_12 = arith.constant dense<0.000000e+00> : vector<2x512xf32>
    %14 = tpu.matmul %13, %3, %cst_12 {dimension_numbers = #tpu.dot_dimension_numbers<[1], [0], [0], [1], [0, 0, 1, 1], [], []>} : vector<2x128xbf16>, vector<128x512xbf16>, vector<2x512xf32> -> vector<2x512xf32>
    %15 = arith.addf %12, %14 : vector<2x512xf32>
    %16 = vector.extract_strided_slice %15 {offsets = [0, 0], sizes = [2, 384], strides = [1, 1]} : vector<2x512xf32> to vector<2x384xf32>
    %17 = arith.negf %16 : vector<2x384xf32>
    %18 = math.exp %17 : vector<2x384xf32>
    %cst_13 = arith.constant 1.000000e+00 : f32
    %19 = vector.broadcast %cst_13 : f32 to vector<2x384xf32>
    %20 = arith.addf %19, %18 : vector<2x384xf32>
    %21 = arith.divf %19, %20 : vector<2x384xf32>
    %22 = vector.extract_strided_slice %21 {offsets = [0, 0], sizes = [2, 128], strides = [1, 1]} : vector<2x384xf32> to vector<2x128xf32>
    %23 = vector.extract_strided_slice %21 {offsets = [0, 128], sizes = [2, 128], strides = [1, 1]} : vector<2x384xf32> to vector<2x128xf32>
    %24 = vector.extract_strided_slice %21 {offsets = [0, 256], sizes = [2, 128], strides = [1, 1]} : vector<2x384xf32> to vector<2x128xf32>
    %25 = vector.extract_strided_slice %15 {offsets = [0, 384], sizes = [2, 128], strides = [1, 1]} : vector<2x512xf32> to vector<2x128xf32>
    %26 = math.tanh %25 : vector<2x128xf32>
    %27 = arith.mulf %23, %11 : vector<2x128xf32>
    %28 = arith.mulf %22, %26 : vector<2x128xf32>
    %29 = arith.addf %27, %28 : vector<2x128xf32>
    %30 = math.tanh %29 : vector<2x128xf32>
    %31 = arith.mulf %24, %30 : vector<2x128xf32>
    %c0_14 = arith.constant 0 : index
    %c0_15 = arith.constant 0 : index
    %32 = vector.load %arg10[%c0_14, %c0_15] : memref<2x128xf32, #tpu.memory_space<vmem>>, vector<2x128xf32>
    tpu.vector_store %arg10[%c0_14, %c0_15], %29 {strides = array<i32>} : memref<2x128xf32, #tpu.memory_space<vmem>>, vector<2x128xf32>,
    %c0_16 = arith.constant 0 : index
    %c0_17 = arith.constant 0 : index
    %33 = vector.load %arg9[%c0_16, %c0_17] : memref<2x128xf32, #tpu.memory_space<vmem>>, vector<2x128xf32>
    tpu.vector_store %arg9[%c0_16, %c0_17], %31 {strides = array<i32>} : memref<2x128xf32, #tpu.memory_space<vmem>>, vector<2x128xf32>,
    %c0_18 = arith.constant 0 : index
    %c0_19 = arith.constant 0 : index
    %34 = vector.load %arg11[%c0_18, %c0_19] : memref<16x128xf32, #tpu.memory_space<vmem>>, vector<2x128xf32>
    tpu.vector_store %arg11[%c0_18, %c0_19], %31 {strides = array<i32>} : memref<16x128xf32, #tpu.memory_space<vmem>>, vector<2x128xf32>,
    %c0_20 = arith.constant 0 : index
    %c0_21 = arith.constant 0 : index
    %35 = vector.load %arg9[%c0_20, %c0_21] : memref<2x128xf32, #tpu.memory_space<vmem>>, vector<2x128xf32>
    %c0_22 = arith.constant 0 : index
    %c0_23 = arith.constant 0 : index
    %36 = vector.load %arg10[%c0_22, %c0_23] : memref<2x128xf32, #tpu.memory_space<vmem>>, vector<2x128xf32>
    %37 = vector.extract_strided_slice %9 {offsets = [2, 0], sizes = [2, 512], strides = [1, 1]} : vector<16x512xf32> to vector<2x512xf32>
    %38 = arith.truncf %35 : vector<2x128xf32> to vector<2x128xbf16>
    %cst_24 = arith.constant dense<0.000000e+00> : vector<2x512xf32>
    %39 = tpu.matmul %38, %3, %cst_24 {dimension_numbers = #tpu.dot_dimension_numbers<[1], [0], [0], [1], [0, 0, 1, 1], [], []>} : vector<2x128xbf16>, vector<128x512xbf16>, vector<2x512xf32> -> vector<2x512xf32>
    %40 = arith.addf %37, %39 : vector<2x512xf32>
    %41 = vector.extract_strided_slice %40 {offsets = [0, 0], sizes = [2, 384], strides = [1, 1]} : vector<2x512xf32> to vector<2x384xf32>
    %42 = arith.negf %41 : vector<2x384xf32>
    %43 = math.exp %42 : vector<2x384xf32>
    %cst_25 = arith.constant 1.000000e+00 : f32
    %44 = vector.broadcast %cst_25 : f32 to vector<2x384xf32>
    %45 = arith.addf %44, %43 : vector<2x384xf32>
    %46 = arith.divf %44, %45 : vector<2x384xf32>
    %47 = vector.extract_strided_slice %46 {offsets = [0, 0], sizes = [2, 128], strides = [1, 1]} : vector<2x384xf32> to vector<2x128xf32>
    %48 = vector.extract_strided_slice %46 {offsets = [0, 128], sizes = [2, 128], strides = [1, 1]} : vector<2x384xf32> to vector<2x128xf32>
    %49 = vector.extract_strided_slice %46 {offsets = [0, 256], sizes = [2, 128], strides = [1, 1]} : vector<2x384xf32> to vector<2x128xf32>
    %50 = vector.extract_strided_slice %40 {offsets = [0, 384], sizes = [2, 128], strides = [1, 1]} : vector<2x512xf32> to vector<2x128xf32>
    %51 = math.tanh %50 : vector<2x128xf32>
    %52 = arith.mulf %48, %36 : vector<2x128xf32>
    %53 = arith.mulf %47, %51 : vector<2x128xf32>
    %54 = arith.addf %52, %53 : vector<2x128xf32>
    %55 = math.tanh %54 : vector<2x128xf32>
    %56 = arith.mulf %49, %55 : vector<2x128xf32>
    %c0_26 = arith.constant 0 : index
    %c0_27 = arith.constant 0 : index
    %57 = vector.load %arg10[%c0_26, %c0_27] : memref<2x128xf32, #tpu.memory_space<vmem>>, vector<2x128xf32>
    tpu.vector_store %arg10[%c0_26, %c0_27], %54 {strides = array<i32>} : memref<2x128xf32, #tpu.memory_space<vmem>>, vector<2x128xf32>,
    %c0_28 = arith.constant 0 : index
    %c0_29 = arith.constant 0 : index
    %58 = vector.load %arg9[%c0_28, %c0_29] : memref<2x128xf32, #tpu.memory_space<vmem>>, vector<2x128xf32>
    tpu.vector_store %arg9[%c0_28, %c0_29], %56 {strides = array<i32>} : memref<2x128xf32, #tpu.memory_space<vmem>>, vector<2x128xf32>,
    %c2 = arith.constant 2 : index
    %c0_30 = arith.constant 0 : index
    %59 = vector.load %arg11[%c2, %c0_30] : memref<16x128xf32, #tpu.memory_space<vmem>>, vector<2x128xf32>
    tpu.vector_store %arg11[%c2, %c0_30], %56 {strides = array<i32>} : memref<16x128xf32, #tpu.memory_space<vmem>>, vector<2x128xf32>,
    %c0_31 = arith.constant 0 : index
    %c0_32 = arith.constant 0 : index
    %60 = vector.load %arg9[%c0_31, %c0_32] : memref<2x128xf32, #tpu.memory_space<vmem>>, vector<2x128xf32>
    %c0_33 = arith.constant 0 : index
    %c0_34 = arith.constant 0 : index
    %61 = vector.load %arg10[%c0_33, %c0_34] : memref<2x128xf32, #tpu.memory_space<vmem>>, vector<2x128xf32>
    %62 = vector.extract_strided_slice %9 {offsets = [4, 0], sizes = [2, 512], strides = [1, 1]} : vector<16x512xf32> to vector<2x512xf32>
    %63 = arith.truncf %60 : vector<2x128xf32> to vector<2x128xbf16>
    %cst_35 = arith.constant dense<0.000000e+00> : vector<2x512xf32>
    %64 = tpu.matmul %63, %3, %cst_35 {dimension_numbers = #tpu.dot_dimension_numbers<[1], [0], [0], [1], [0, 0, 1, 1], [], []>} : vector<2x128xbf16>, vector<128x512xbf16>, vector<2x512xf32> -> vector<2x512xf32>
    %65 = arith.addf %62, %64 : vector<2x512xf32>
    %66 = vector.extract_strided_slice %65 {offsets = [0, 0], sizes = [2, 384], strides = [1, 1]} : vector<2x512xf32> to vector<2x384xf32>
    %67 = arith.negf %66 : vector<2x384xf32>
    %68 = math.exp %67 : vector<2x384xf32>
    %cst_36 = arith.constant 1.000000e+00 : f32
    %69 = vector.broadcast %cst_36 : f32 to vector<2x384xf32>
    %70 = arith.addf %69, %68 : vector<2x384xf32>
    %71 = arith.divf %69, %70 : vector<2x384xf32>
    %72 = vector.extract_strided_slice %71 {offsets = [0, 0], sizes = [2, 128], strides = [1, 1]} : vector<2x384xf32> to vector<2x128xf32>
    %73 = vector.extract_strided_slice %71 {offsets = [0, 128], sizes = [2, 128], strides = [1, 1]} : vector<2x384xf32> to vector<2x128xf32>
    %74 = vector.extract_strided_slice %71 {offsets = [0, 256], sizes = [2, 128], strides = [1, 1]} : vector<2x384xf32> to vector<2x128xf32>
    %75 = vector.extract_strided_slice %65 {offsets = [0, 384], sizes = [2, 128], strides = [1, 1]} : vector<2x512xf32> to vector<2x128xf32>
    %76 = math.tanh %75 : vector<2x128xf32>
    %77 = arith.mulf %73, %61 : vector<2x128xf32>
    %78 = arith.mulf %72, %76 : vector<2x128xf32>
    %79 = arith.addf %77, %78 : vector<2x128xf32>
    %80 = math.tanh %79 : vector<2x128xf32>
    %81 = arith.mulf %74, %80 : vector<2x128xf32>
    %c0_37 = arith.constant 0 : index
    %c0_38 = arith.constant 0 : index
    %82 = vector.load %arg10[%c0_37, %c0_38] : memref<2x128xf32, #tpu.memory_space<vmem>>, vector<2x128xf32>
    tpu.vector_store %arg10[%c0_37, %c0_38], %79 {strides = array<i32>} : memref<2x128xf32, #tpu.memory_space<vmem>>, vector<2x128xf32>,
    %c0_39 = arith.constant 0 : index
    %c0_40 = arith.constant 0 : index
    %83 = vector.load %arg9[%c0_39, %c0_40] : memref<2x128xf32, #tpu.memory_space<vmem>>, vector<2x128xf32>
    tpu.vector_store %arg9[%c0_39, %c0_40], %81 {strides = array<i32>} : memref<2x128xf32, #tpu.memory_space<vmem>>, vector<2x128xf32>,
    %c4 = arith.constant 4 : index
    %c0_41 = arith.constant 0 : index
    %84 = vector.load %arg11[%c4, %c0_41] : memref<16x128xf32, #tpu.memory_space<vmem>>, vector<2x128xf32>
    tpu.vector_store %arg11[%c4, %c0_41], %81 {strides = array<i32>} : memref<16x128xf32, #tpu.memory_space<vmem>>, vector<2x128xf32>,
    %c0_42 = arith.constant 0 : index
    %c0_43 = arith.constant 0 : index
    %85 = vector.load %arg9[%c0_42, %c0_43] : memref<2x128xf32, #tpu.memory_space<vmem>>, vector<2x128xf32>
    %c0_44 = arith.constant 0 : index
    %c0_45 = arith.constant 0 : index
    %86 = vector.load %arg10[%c0_44, %c0_45] : memref<2x128xf32, #tpu.memory_space<vmem>>, vector<2x128xf32>
    %87 = vector.extract_strided_slice %9 {offsets = [6, 0], sizes = [2, 512], strides = [1, 1]} : vector<16x512xf32> to vector<2x512xf32>
    %88 = arith.truncf %85 : vector<2x128xf32> to vector<2x128xbf16>
    %cst_46 = arith.constant dense<0.000000e+00> : vector<2x512xf32>
    %89 = tpu.matmul %88, %3, %cst_46 {dimension_numbers = #tpu.dot_dimension_numbers<[1], [0], [0], [1], [0, 0, 1, 1], [], []>} : vector<2x128xbf16>, vector<128x512xbf16>, vector<2x512xf32> -> vector<2x512xf32>
    %90 = arith.addf %87, %89 : vector<2x512xf32>
    %91 = vector.extract_strided_slice %90 {offsets = [0, 0], sizes = [2, 384], strides = [1, 1]} : vector<2x512xf32> to vector<2x384xf32>
    %92 = arith.negf %91 : vector<2x384xf32>
    %93 = math.exp %92 : vector<2x384xf32>
    %cst_47 = arith.constant 1.000000e+00 : f32
    %94 = vector.broadcast %cst_47 : f32 to vector<2x384xf32>
    %95 = arith.addf %94, %93 : vector<2x384xf32>
    %96 = arith.divf %94, %95 : vector<2x384xf32>
    %97 = vector.extract_strided_slice %96 {offsets = [0, 0], sizes = [2, 128], strides = [1, 1]} : vector<2x384xf32> to vector<2x128xf32>
    %98 = vector.extract_strided_slice %96 {offsets = [0, 128], sizes = [2, 128], strides = [1, 1]} : vector<2x384xf32> to vector<2x128xf32>
    %99 = vector.extract_strided_slice %96 {offsets = [0, 256], sizes = [2, 128], strides = [1, 1]} : vector<2x384xf32> to vector<2x128xf32>
    %100 = vector.extract_strided_slice %90 {offsets = [0, 384], sizes = [2, 128], strides = [1, 1]} : vector<2x512xf32> to vector<2x128xf32>
    %101 = math.tanh %100 : vector<2x128xf32>
    %102 = arith.mulf %98, %86 : vector<2x128xf32>
    %103 = arith.mulf %97, %101 : vector<2x128xf32>
    %104 = arith.addf %102, %103 : vector<2x128xf32>
    %105 = math.tanh %104 : vector<2x128xf32>
    %106 = arith.mulf %99, %105 : vector<2x128xf32>
    %c0_48 = arith.constant 0 : index
    %c0_49 = arith.constant 0 : index
    %107 = vector.load %arg10[%c0_48, %c0_49] : memref<2x128xf32, #tpu.memory_space<vmem>>, vector<2x128xf32>
    tpu.vector_store %arg10[%c0_48, %c0_49], %104 {strides = array<i32>} : memref<2x128xf32, #tpu.memory_space<vmem>>, vector<2x128xf32>,
    %c0_50 = arith.constant 0 : index
    %c0_51 = arith.constant 0 : index
    %108 = vector.load %arg9[%c0_50, %c0_51] : memref<2x128xf32, #tpu.memory_space<vmem>>, vector<2x128xf32>
    tpu.vector_store %arg9[%c0_50, %c0_51], %106 {strides = array<i32>} : memref<2x128xf32, #tpu.memory_space<vmem>>, vector<2x128xf32>,
    %c6 = arith.constant 6 : index
    %c0_52 = arith.constant 0 : index
    %109 = vector.load %arg11[%c6, %c0_52] : memref<16x128xf32, #tpu.memory_space<vmem>>, vector<2x128xf32>
    tpu.vector_store %arg11[%c6, %c0_52], %106 {strides = array<i32>} : memref<16x128xf32, #tpu.memory_space<vmem>>, vector<2x128xf32>,
    %c0_53 = arith.constant 0 : index
    %c0_54 = arith.constant 0 : index
    %110 = vector.load %arg9[%c0_53, %c0_54] : memref<2x128xf32, #tpu.memory_space<vmem>>, vector<2x128xf32>
    %c0_55 = arith.constant 0 : index
    %c0_56 = arith.constant 0 : index
    %111 = vector.load %arg10[%c0_55, %c0_56] : memref<2x128xf32, #tpu.memory_space<vmem>>, vector<2x128xf32>
    %112 = vector.extract_strided_slice %9 {offsets = [8, 0], sizes = [2, 512], strides = [1, 1]} : vector<16x512xf32> to vector<2x512xf32>
    %113 = arith.truncf %110 : vector<2x128xf32> to vector<2x128xbf16>
    %cst_57 = arith.constant dense<0.000000e+00> : vector<2x512xf32>
    %114 = tpu.matmul %113, %3, %cst_57 {dimension_numbers = #tpu.dot_dimension_numbers<[1], [0], [0], [1], [0, 0, 1, 1], [], []>} : vector<2x128xbf16>, vector<128x512xbf16>, vector<2x512xf32> -> vector<2x512xf32>
    %115 = arith.addf %112, %114 : vector<2x512xf32>
    %116 = vector.extract_strided_slice %115 {offsets = [0, 0], sizes = [2, 384], strides = [1, 1]} : vector<2x512xf32> to vector<2x384xf32>
    %117 = arith.negf %116 : vector<2x384xf32>
    %118 = math.exp %117 : vector<2x384xf32>
    %cst_58 = arith.constant 1.000000e+00 : f32
    %119 = vector.broadcast %cst_58 : f32 to vector<2x384xf32>
    %120 = arith.addf %119, %118 : vector<2x384xf32>
    %121 = arith.divf %119, %120 : vector<2x384xf32>
    %122 = vector.extract_strided_slice %121 {offsets = [0, 0], sizes = [2, 128], strides = [1, 1]} : vector<2x384xf32> to vector<2x128xf32>
    %123 = vector.extract_strided_slice %121 {offsets = [0, 128], sizes = [2, 128], strides = [1, 1]} : vector<2x384xf32> to vector<2x128xf32>
    %124 = vector.extract_strided_slice %121 {offsets = [0, 256], sizes = [2, 128], strides = [1, 1]} : vector<2x384xf32> to vector<2x128xf32>
    %125 = vector.extract_strided_slice %115 {offsets = [0, 384], sizes = [2, 128], strides = [1, 1]} : vector<2x512xf32> to vector<2x128xf32>
    %126 = math.tanh %125 : vector<2x128xf32>
    %127 = arith.mulf %123, %111 : vector<2x128xf32>
    %128 = arith.mulf %122, %126 : vector<2x128xf32>
    %129 = arith.addf %127, %128 : vector<2x128xf32>
    %130 = math.tanh %129 : vector<2x128xf32>
    %131 = arith.mulf %124, %130 : vector<2x128xf32>
    %c0_59 = arith.constant 0 : index
    %c0_60 = arith.constant 0 : index
    %132 = vector.load %arg10[%c0_59, %c0_60] : memref<2x128xf32, #tpu.memory_space<vmem>>, vector<2x128xf32>
    tpu.vector_store %arg10[%c0_59, %c0_60], %129 {strides = array<i32>} : memref<2x128xf32, #tpu.memory_space<vmem>>, vector<2x128xf32>,
    %c0_61 = arith.constant 0 : index
    %c0_62 = arith.constant 0 : index
    %133 = vector.load %arg9[%c0_61, %c0_62] : memref<2x128xf32, #tpu.memory_space<vmem>>, vector<2x128xf32>
    tpu.vector_store %arg9[%c0_61, %c0_62], %131 {strides = array<i32>} : memref<2x128xf32, #tpu.memory_space<vmem>>, vector<2x128xf32>,
    %c8 = arith.constant 8 : index
    %c0_63 = arith.constant 0 : index
    %134 = vector.load %arg11[%c8, %c0_63] : memref<16x128xf32, #tpu.memory_space<vmem>>, vector<2x128xf32>
    tpu.vector_store %arg11[%c8, %c0_63], %131 {strides = array<i32>} : memref<16x128xf32, #tpu.memory_space<vmem>>, vector<2x128xf32>,
    %c0_64 = arith.constant 0 : index
    %c0_65 = arith.constant 0 : index
    %135 = vector.load %arg9[%c0_64, %c0_65] : memref<2x128xf32, #tpu.memory_space<vmem>>, vector<2x128xf32>
    %c0_66 = arith.constant 0 : index
    %c0_67 = arith.constant 0 : index
    %136 = vector.load %arg10[%c0_66, %c0_67] : memref<2x128xf32, #tpu.memory_space<vmem>>, vector<2x128xf32>
    %137 = vector.extract_strided_slice %9 {offsets = [10, 0], sizes = [2, 512], strides = [1, 1]} : vector<16x512xf32> to vector<2x512xf32>
    %138 = arith.truncf %135 : vector<2x128xf32> to vector<2x128xbf16>
    %cst_68 = arith.constant dense<0.000000e+00> : vector<2x512xf32>
    %139 = tpu.matmul %138, %3, %cst_68 {dimension_numbers = #tpu.dot_dimension_numbers<[1], [0], [0], [1], [0, 0, 1, 1], [], []>} : vector<2x128xbf16>, vector<128x512xbf16>, vector<2x512xf32> -> vector<2x512xf32>
    %140 = arith.addf %137, %139 : vector<2x512xf32>
    %141 = vector.extract_strided_slice %140 {offsets = [0, 0], sizes = [2, 384], strides = [1, 1]} : vector<2x512xf32> to vector<2x384xf32>
    %142 = arith.negf %141 : vector<2x384xf32>
    %143 = math.exp %142 : vector<2x384xf32>
    %cst_69 = arith.constant 1.000000e+00 : f32
    %144 = vector.broadcast %cst_69 : f32 to vector<2x384xf32>
    %145 = arith.addf %144, %143 : vector<2x384xf32>
    %146 = arith.divf %144, %145 : vector<2x384xf32>
    %147 = vector.extract_strided_slice %146 {offsets = [0, 0], sizes = [2, 128], strides = [1, 1]} : vector<2x384xf32> to vector<2x128xf32>
    %148 = vector.extract_strided_slice %146 {offsets = [0, 128], sizes = [2, 128], strides = [1, 1]} : vector<2x384xf32> to vector<2x128xf32>
    %149 = vector.extract_strided_slice %146 {offsets = [0, 256], sizes = [2, 128], strides = [1, 1]} : vector<2x384xf32> to vector<2x128xf32>
    %150 = vector.extract_strided_slice %140 {offsets = [0, 384], sizes = [2, 128], strides = [1, 1]} : vector<2x512xf32> to vector<2x128xf32>
    %151 = math.tanh %150 : vector<2x128xf32>
    %152 = arith.mulf %148, %136 : vector<2x128xf32>
    %153 = arith.mulf %147, %151 : vector<2x128xf32>
    %154 = arith.addf %152, %153 : vector<2x128xf32>
    %155 = math.tanh %154 : vector<2x128xf32>
    %156 = arith.mulf %149, %155 : vector<2x128xf32>
    %c0_70 = arith.constant 0 : index
    %c0_71 = arith.constant 0 : index
    %157 = vector.load %arg10[%c0_70, %c0_71] : memref<2x128xf32, #tpu.memory_space<vmem>>, vector<2x128xf32>
    tpu.vector_store %arg10[%c0_70, %c0_71], %154 {strides = array<i32>} : memref<2x128xf32, #tpu.memory_space<vmem>>, vector<2x128xf32>,
    %c0_72 = arith.constant 0 : index
    %c0_73 = arith.constant 0 : index
    %158 = vector.load %arg9[%c0_72, %c0_73] : memref<2x128xf32, #tpu.memory_space<vmem>>, vector<2x128xf32>
    tpu.vector_store %arg9[%c0_72, %c0_73], %156 {strides = array<i32>} : memref<2x128xf32, #tpu.memory_space<vmem>>, vector<2x128xf32>,
    %c10 = arith.constant 10 : index
    %c0_74 = arith.constant 0 : index
    %159 = vector.load %arg11[%c10, %c0_74] : memref<16x128xf32, #tpu.memory_space<vmem>>, vector<2x128xf32>
    tpu.vector_store %arg11[%c10, %c0_74], %156 {strides = array<i32>} : memref<16x128xf32, #tpu.memory_space<vmem>>, vector<2x128xf32>,
    %c0_75 = arith.constant 0 : index
    %c0_76 = arith.constant 0 : index
    %160 = vector.load %arg9[%c0_75, %c0_76] : memref<2x128xf32, #tpu.memory_space<vmem>>, vector<2x128xf32>
    %c0_77 = arith.constant 0 : index
    %c0_78 = arith.constant 0 : index
    %161 = vector.load %arg10[%c0_77, %c0_78] : memref<2x128xf32, #tpu.memory_space<vmem>>, vector<2x128xf32>
    %162 = vector.extract_strided_slice %9 {offsets = [12, 0], sizes = [2, 512], strides = [1, 1]} : vector<16x512xf32> to vector<2x512xf32>
    %163 = arith.truncf %160 : vector<2x128xf32> to vector<2x128xbf16>
    %cst_79 = arith.constant dense<0.000000e+00> : vector<2x512xf32>
    %164 = tpu.matmul %163, %3, %cst_79 {dimension_numbers = #tpu.dot_dimension_numbers<[1], [0], [0], [1], [0, 0, 1, 1], [], []>} : vector<2x128xbf16>, vector<128x512xbf16>, vector<2x512xf32> -> vector<2x512xf32>
    %165 = arith.addf %162, %164 : vector<2x512xf32>
    %166 = vector.extract_strided_slice %165 {offsets = [0, 0], sizes = [2, 384], strides = [1, 1]} : vector<2x512xf32> to vector<2x384xf32>
    %167 = arith.negf %166 : vector<2x384xf32>
    %168 = math.exp %167 : vector<2x384xf32>
    %cst_80 = arith.constant 1.000000e+00 : f32
    %169 = vector.broadcast %cst_80 : f32 to vector<2x384xf32>
    %170 = arith.addf %169, %168 : vector<2x384xf32>
    %171 = arith.divf %169, %170 : vector<2x384xf32>
    %172 = vector.extract_strided_slice %171 {offsets = [0, 0], sizes = [2, 128], strides = [1, 1]} : vector<2x384xf32> to vector<2x128xf32>
    %173 = vector.extract_strided_slice %171 {offsets = [0, 128], sizes = [2, 128], strides = [1, 1]} : vector<2x384xf32> to vector<2x128xf32>
    %174 = vector.extract_strided_slice %171 {offsets = [0, 256], sizes = [2, 128], strides = [1, 1]} : vector<2x384xf32> to vector<2x128xf32>
    %175 = vector.extract_strided_slice %165 {offsets = [0, 384], sizes = [2, 128], strides = [1, 1]} : vector<2x512xf32> to vector<2x128xf32>
    %176 = math.tanh %175 : vector<2x128xf32>
    %177 = arith.mulf %173, %161 : vector<2x128xf32>
    %178 = arith.mulf %172, %176 : vector<2x128xf32>
    %179 = arith.addf %177, %178 : vector<2x128xf32>
    %180 = math.tanh %179 : vector<2x128xf32>
    %181 = arith.mulf %174, %180 : vector<2x128xf32>
    %c0_81 = arith.constant 0 : index
    %c0_82 = arith.constant 0 : index
    %182 = vector.load %arg10[%c0_81, %c0_82] : memref<2x128xf32, #tpu.memory_space<vmem>>, vector<2x128xf32>
    tpu.vector_store %arg10[%c0_81, %c0_82], %179 {strides = array<i32>} : memref<2x128xf32, #tpu.memory_space<vmem>>, vector<2x128xf32>,
    %c0_83 = arith.constant 0 : index
    %c0_84 = arith.constant 0 : index
    %183 = vector.load %arg9[%c0_83, %c0_84] : memref<2x128xf32, #tpu.memory_space<vmem>>, vector<2x128xf32>
    tpu.vector_store %arg9[%c0_83, %c0_84], %181 {strides = array<i32>} : memref<2x128xf32, #tpu.memory_space<vmem>>, vector<2x128xf32>,
    %c12 = arith.constant 12 : index
    %c0_85 = arith.constant 0 : index
    %184 = vector.load %arg11[%c12, %c0_85] : memref<16x128xf32, #tpu.memory_space<vmem>>, vector<2x128xf32>
    tpu.vector_store %arg11[%c12, %c0_85], %181 {strides = array<i32>} : memref<16x128xf32, #tpu.memory_space<vmem>>, vector<2x128xf32>,
    %c0_86 = arith.constant 0 : index
    %c0_87 = arith.constant 0 : index
    %185 = vector.load %arg9[%c0_86, %c0_87] : memref<2x128xf32, #tpu.memory_space<vmem>>, vector<2x128xf32>
    %c0_88 = arith.constant 0 : index
    %c0_89 = arith.constant 0 : index
    %186 = vector.load %arg10[%c0_88, %c0_89] : memref<2x128xf32, #tpu.memory_space<vmem>>, vector<2x128xf32>
    %187 = vector.extract_strided_slice %9 {offsets = [14, 0], sizes = [2, 512], strides = [1, 1]} : vector<16x512xf32> to vector<2x512xf32>
    %188 = arith.truncf %185 : vector<2x128xf32> to vector<2x128xbf16>
    %cst_90 = arith.constant dense<0.000000e+00> : vector<2x512xf32>
    %189 = tpu.matmul %188, %3, %cst_90 {dimension_numbers = #tpu.dot_dimension_numbers<[1], [0], [0], [1], [0, 0, 1, 1], [], []>} : vector<2x128xbf16>, vector<128x512xbf16>, vector<2x512xf32> -> vector<2x512xf32>
    %190 = arith.addf %187, %189 : vector<2x512xf32>
    %191 = vector.extract_strided_slice %190 {offsets = [0, 0], sizes = [2, 384], strides = [1, 1]} : vector<2x512xf32> to vector<2x384xf32>
    %192 = arith.negf %191 : vector<2x384xf32>
    %193 = math.exp %192 : vector<2x384xf32>
    %cst_91 = arith.constant 1.000000e+00 : f32
    %194 = vector.broadcast %cst_91 : f32 to vector<2x384xf32>
    %195 = arith.addf %194, %193 : vector<2x384xf32>
    %196 = arith.divf %194, %195 : vector<2x384xf32>
    %197 = vector.extract_strided_slice %196 {offsets = [0, 0], sizes = [2, 128], strides = [1, 1]} : vector<2x384xf32> to vector<2x128xf32>
    %198 = vector.extract_strided_slice %196 {offsets = [0, 128], sizes = [2, 128], strides = [1, 1]} : vector<2x384xf32> to vector<2x128xf32>
    %199 = vector.extract_strided_slice %196 {offsets = [0, 256], sizes = [2, 128], strides = [1, 1]} : vector<2x384xf32> to vector<2x128xf32>
    %200 = vector.extract_strided_slice %190 {offsets = [0, 384], sizes = [2, 128], strides = [1, 1]} : vector<2x512xf32> to vector<2x128xf32>
    %201 = math.tanh %200 : vector<2x128xf32>
    %202 = arith.mulf %198, %186 : vector<2x128xf32>
    %203 = arith.mulf %197, %201 : vector<2x128xf32>
    %204 = arith.addf %202, %203 : vector<2x128xf32>
    %205 = math.tanh %204 : vector<2x128xf32>
    %206 = arith.mulf %199, %205 : vector<2x128xf32>
    %c0_92 = arith.constant 0 : index
    %c0_93 = arith.constant 0 : index
    %207 = vector.load %arg10[%c0_92, %c0_93] : memref<2x128xf32, #tpu.memory_space<vmem>>, vector<2x128xf32>
    tpu.vector_store %arg10[%c0_92, %c0_93], %204 {strides = array<i32>} : memref<2x128xf32, #tpu.memory_space<vmem>>, vector<2x128xf32>,
    %c0_94 = arith.constant 0 : index
    %c0_95 = arith.constant 0 : index
    %208 = vector.load %arg9[%c0_94, %c0_95] : memref<2x128xf32, #tpu.memory_space<vmem>>, vector<2x128xf32>
    tpu.vector_store %arg9[%c0_94, %c0_95], %206 {strides = array<i32>} : memref<2x128xf32, #tpu.memory_space<vmem>>, vector<2x128xf32>,
    %c14 = arith.constant 14 : index
    %c0_96 = arith.constant 0 : index
    %209 = vector.load %arg11[%c14, %c0_96] : memref<16x128xf32, #tpu.memory_space<vmem>>, vector<2x128xf32>
    tpu.vector_store %arg11[%c14, %c0_96], %206 {strides = array<i32>} : memref<16x128xf32, #tpu.memory_space<vmem>>, vector<2x128xf32>,
    %c0_97 = arith.constant 0 : index
    %c0_98 = arith.constant 0 : index
    %210 = vector.load %arg11[%c0_97, %c0_98] : memref<16x128xf32, #tpu.memory_space<vmem>>, vector<16x128xf32>
    %c0_99 = arith.constant 0 : index
    %c0_100 = arith.constant 0 : index
    %211 = vector.load %arg2[%c0_99, %c0_100] : memref<16x1xf32, #tpu.memory_space<vmem>>, vector<16x1xf32>
    %212 = vector.broadcast %211 : vector<16x1xf32> to vector<16x128xf32>
    %213 = arith.mulf %210, %212 : vector<16x128xf32>
    %214 = arith.truncf %213 : vector<16x128xf32> to vector<16x128xbf16>
    %c0_101 = arith.constant 0 : index
    %c0_102 = arith.constant 0 : index
    %215 = vector.load %arg6[%c0_101, %c0_102] : memref<128x32xbf16, #tpu.memory_space<vmem>>, vector<128x32xbf16>
    %cst_103 = arith.constant dense<0.000000e+00> : vector<16x32xf32>
    %216 = tpu.matmul %214, %215, %cst_103 {dimension_numbers = #tpu.dot_dimension_numbers<[1], [0], [0], [1], [0, 0, 1, 1], [], []>} : vector<16x128xbf16>, vector<128x32xbf16>, vector<16x32xf32> -> vector<16x32xf32>
    %c0_104 = arith.constant 0 : index
    %c0_105 = arith.constant 0 : index
    %217 = vector.load %arg7[%c0_104, %c0_105] : memref<1x32xf32, #tpu.memory_space<vmem>>, vector<1x32xf32>
    %218 = vector.broadcast %217 : vector<1x32xf32> to vector<16x32xf32>
    %219 = arith.addf %216, %218 : vector<16x32xf32>
    %c0_106 = arith.constant 0 : index
    %c0_107 = arith.constant 0 : index
    %220 = vector.load %arg8[%c0_106, %c0_107] : memref<16x32xf32, #tpu.memory_space<vmem>>, vector<16x32xf32>
    tpu.vector_store %arg8[%c0_106, %c0_107], %219 {strides = array<i32>} : memref<16x32xf32, #tpu.memory_space<vmem>>, vector<16x32xf32>,
    return
  }
  func.func @transform_0(%arg0: i32) -> (i32, i32) {
    %c0_i32 = arith.constant 0 : i32
    %c0_i32_0 = arith.constant 0 : i32
    return %arg0, %c0_i32 : i32, i32
  }
  func.func @transform_1(%arg0: i32) -> (i32, i32) {
    %c0_i32 = arith.constant 0 : i32
    %c0_i32_0 = arith.constant 0 : i32
    return %arg0, %c0_i32 : i32, i32
  }
  func.func @transform_2(%arg0: i32) -> (i32, i32) {
    %c0_i32 = arith.constant 0 : i32
    %c0_i32_0 = arith.constant 0 : i32
    %c0_i32_1 = arith.constant 0 : i32
    return %c0_i32, %c0_i32_0 : i32, i32
  }
  func.func @transform_3(%arg0: i32) -> (i32, i32) {
    %c0_i32 = arith.constant 0 : i32
    %c0_i32_0 = arith.constant 0 : i32
    %c0_i32_1 = arith.constant 0 : i32
    return %c0_i32, %c0_i32_0 : i32, i32
  }
  func.func @transform_4(%arg0: i32) -> (i32, i32) {
    %c0_i32 = arith.constant 0 : i32
    %c0_i32_0 = arith.constant 0 : i32
    %c0_i32_1 = arith.constant 0 : i32
    return %c0_i32, %c0_i32_0 : i32, i32
  }
  func.func @transform_5(%arg0: i32) -> (i32, i32) {
    %c0_i32 = arith.constant 0 : i32
    %c0_i32_0 = arith.constant 0 : i32
    %c0_i32_1 = arith.constant 0 : i32
    return %c0_i32, %c0_i32_0 : i32, i32
  }
  func.func @transform_6(%arg0: i32) -> (i32, i32) {
    %c0_i32 = arith.constant 0 : i32
    %c0_i32_0 = arith.constant 0 : i32
    %c0_i32_1 = arith.constant 0 : i32
    return %c0_i32, %c0_i32_0 : i32, i32
  }
  func.func @transform_7(%arg0: i32) -> (i32, i32) {
    %c0_i32 = arith.constant 0 : i32
    %c0_i32_0 = arith.constant 0 : i32
    return %arg0, %c0_i32 : i32, i32
  }
}

module attributes {stable_mosaic.version = 11 : i64} {
  func.func @_predictor_kernel(%arg0: i32, %arg1: memref<4x32xbf16, #tpu.memory_space<vmem>>, %arg2: memref<2x32xbf16, #tpu.memory_space<vmem>>, %arg3: memref<32x128xbf16, #tpu.memory_space<vmem>>, %arg4: memref<32x128xbf16, #tpu.memory_space<vmem>>, %arg5: memref<1x128xf32, #tpu.memory_space<vmem>>, %arg6: memref<2x128xf32, #tpu.memory_space<vmem>>) attributes {dimension_semantics = [#tpu.dimension_semantics<arbitrary>], iteration_bounds = array<i64: 1>, scalar_prefetch = 0 : i64, scratch_operands = 0 : i64, tpu.core_type = #tpu.core_type<tc>, window_params = [{pipeline_mode = #tpu.pipeline_mode<synchronous>, transform_indices = @transform_0, window_bounds = array<i64: 4, 32>}, {pipeline_mode = #tpu.pipeline_mode<synchronous>, transform_indices = @transform_1, window_bounds = array<i64: 2, 32>}, {pipeline_mode = #tpu.pipeline_mode<synchronous>, transform_indices = @transform_2, window_bounds = array<i64: 32, 128>}, {pipeline_mode = #tpu.pipeline_mode<synchronous>, transform_indices = @transform_3, window_bounds = array<i64: 32, 128>}, {pipeline_mode = #tpu.pipeline_mode<synchronous>, transform_indices = @transform_4, window_bounds = array<i64: 1, 128>}, {pipeline_mode = #tpu.pipeline_mode<synchronous>, transform_indices = @transform_5, window_bounds = array<i64: 2, 128>}]} {
    %c0 = arith.constant 0 : index
    %c0_0 = arith.constant 0 : index
    %0 = vector.load %arg1[%c0, %c0_0] : memref<4x32xbf16, #tpu.memory_space<vmem>>, vector<4x32xbf16>
    %c0_1 = arith.constant 0 : index
    %c0_2 = arith.constant 0 : index
    %1 = vector.load %arg3[%c0_1, %c0_2] : memref<32x128xbf16, #tpu.memory_space<vmem>>, vector<32x128xbf16>
    %cst = arith.constant dense<0.000000e+00> : vector<4x128xf32>
    %2 = tpu.matmul %0, %1, %cst {dimension_numbers = #tpu.dot_dimension_numbers<[1], [0], [0], [1], [0, 0, 1, 1], [], []>} : vector<4x32xbf16>, vector<32x128xbf16>, vector<4x128xf32> -> vector<4x128xf32>
    %3 = vector.extract_strided_slice %2 {offsets = [0, 0], sizes = [2, 128], strides = [1, 1]} : vector<4x128xf32> to vector<2x128xf32>
    %4 = arith.mulf %3, %3 : vector<2x128xf32>
    %cst_3 = arith.constant dense<0.000000e+00> : vector<2xf32>
    %5 = vector.multi_reduction <add>, %4, %cst_3 [1] : vector<2x128xf32> to vector<2xf32>
    %6 = vector.shape_cast %5 : vector<2xf32> to vector<2x1xf32>
    %cst_4 = arith.constant 1.000000e-10 : f32
    %7 = vector.broadcast %cst_4 : f32 to vector<2x1xf32>
    %8 = arith.maximumf %6, %7 : vector<2x1xf32>
    %9 = math.rsqrt %8 : vector<2x1xf32>
    %10 = vector.broadcast %9 : vector<2x1xf32> to vector<2x128xf32>
    %11 = arith.mulf %3, %10 : vector<2x128xf32>
    %12 = vector.extract_strided_slice %2 {offsets = [2, 0], sizes = [2, 128], strides = [1, 1]} : vector<4x128xf32> to vector<2x128xf32>
    %13 = arith.mulf %12, %12 : vector<2x128xf32>
    %cst_5 = arith.constant dense<0.000000e+00> : vector<2xf32>
    %14 = vector.multi_reduction <add>, %13, %cst_5 [1] : vector<2x128xf32> to vector<2xf32>
    %15 = vector.shape_cast %14 : vector<2xf32> to vector<2x1xf32>
    %cst_6 = arith.constant 1.000000e-10 : f32
    %16 = vector.broadcast %cst_6 : f32 to vector<2x1xf32>
    %17 = arith.maximumf %15, %16 : vector<2x1xf32>
    %18 = math.rsqrt %17 : vector<2x1xf32>
    %19 = vector.broadcast %18 : vector<2x1xf32> to vector<2x128xf32>
    %20 = arith.mulf %12, %19 : vector<2x128xf32>
    %c0_7 = arith.constant 0 : index
    %c0_8 = arith.constant 0 : index
    %21 = vector.load %arg2[%c0_7, %c0_8] : memref<2x32xbf16, #tpu.memory_space<vmem>>, vector<2x32xbf16>
    %c0_9 = arith.constant 0 : index
    %c0_10 = arith.constant 0 : index
    %22 = vector.load %arg4[%c0_9, %c0_10] : memref<32x128xbf16, #tpu.memory_space<vmem>>, vector<32x128xbf16>
    %cst_11 = arith.constant dense<0.000000e+00> : vector<2x128xf32>
    %23 = tpu.matmul %21, %22, %cst_11 {dimension_numbers = #tpu.dot_dimension_numbers<[1], [0], [0], [1], [0, 0, 1, 1], [], []>} : vector<2x32xbf16>, vector<32x128xbf16>, vector<2x128xf32> -> vector<2x128xf32>
    %c0_12 = arith.constant 0 : index
    %c0_13 = arith.constant 0 : index
    %24 = vector.load %arg5[%c0_12, %c0_13] : memref<1x128xf32, #tpu.memory_space<vmem>>, vector<1x128xf32>
    %25 = vector.broadcast %24 : vector<1x128xf32> to vector<2x128xf32>
    %26 = arith.addf %23, %25 : vector<2x128xf32>
    %27 = arith.mulf %26, %26 : vector<2x128xf32>
    %cst_14 = arith.constant dense<0.000000e+00> : vector<2xf32>
    %28 = vector.multi_reduction <add>, %27, %cst_14 [1] : vector<2x128xf32> to vector<2xf32>
    %29 = vector.shape_cast %28 : vector<2xf32> to vector<2x1xf32>
    %cst_15 = arith.constant 1.000000e-10 : f32
    %30 = vector.broadcast %cst_15 : f32 to vector<2x1xf32>
    %31 = arith.maximumf %29, %30 : vector<2x1xf32>
    %32 = math.rsqrt %31 : vector<2x1xf32>
    %33 = vector.broadcast %32 : vector<2x1xf32> to vector<2x128xf32>
    %34 = arith.mulf %26, %33 : vector<2x128xf32>
    %35 = arith.addf %11, %20 : vector<2x128xf32>
    %cst_16 = arith.constant 1.200000e+00 : f32
    %36 = vector.broadcast %cst_16 : f32 to vector<2x128xf32>
    %37 = arith.mulf %34, %36 : vector<2x128xf32>
    %38 = arith.addf %35, %37 : vector<2x128xf32>
    %39 = math.tanh %38 : vector<2x128xf32>
    %c0_17 = arith.constant 0 : index
    %c0_18 = arith.constant 0 : index
    %40 = vector.load %arg6[%c0_17, %c0_18] : memref<2x128xf32, #tpu.memory_space<vmem>>, vector<2x128xf32>
    tpu.vector_store %arg6[%c0_17, %c0_18], %39 {strides = array<i32>} : memref<2x128xf32, #tpu.memory_space<vmem>>, vector<2x128xf32>,
    return
  }
  func.func @transform_0(%arg0: i32) -> (i32, i32) {
    %c0_i32 = arith.constant 0 : i32
    %c0_i32_0 = arith.constant 0 : i32
    %c0_i32_1 = arith.constant 0 : i32
    return %c0_i32, %c0_i32_0 : i32, i32
  }
  func.func @transform_1(%arg0: i32) -> (i32, i32) {
    %c0_i32 = arith.constant 0 : i32
    %c0_i32_0 = arith.constant 0 : i32
    %c0_i32_1 = arith.constant 0 : i32
    return %c0_i32, %c0_i32_0 : i32, i32
  }
  func.func @transform_2(%arg0: i32) -> (i32, i32) {
    %c0_i32 = arith.constant 0 : i32
    %c0_i32_0 = arith.constant 0 : i32
    %c0_i32_1 = arith.constant 0 : i32
    return %c0_i32, %c0_i32_0 : i32, i32
  }
  func.func @transform_3(%arg0: i32) -> (i32, i32) {
    %c0_i32 = arith.constant 0 : i32
    %c0_i32_0 = arith.constant 0 : i32
    %c0_i32_1 = arith.constant 0 : i32
    return %c0_i32, %c0_i32_0 : i32, i32
  }
  func.func @transform_4(%arg0: i32) -> (i32, i32) {
    %c0_i32 = arith.constant 0 : i32
    %c0_i32_0 = arith.constant 0 : i32
    %c0_i32_1 = arith.constant 0 : i32
    return %c0_i32, %c0_i32_0 : i32, i32
  }
  func.func @transform_5(%arg0: i32) -> (i32, i32) {
    %c0_i32 = arith.constant 0 : i32
    %c0_i32_0 = arith.constant 0 : i32
    %c0_i32_1 = arith.constant 0 : i32
    return %c0_i32, %c0_i32_0 : i32, i32
  }
}

</mosaic_0001>

<bundles_post_ra>
// kernel: model_forward.3
= control target key start
LH: loop header
LB: loop body
LE: loop exit
PB: predicated region body
PF: predicated region fallthrough
CT: control target
= control target key end

     0   :  { %v260_v1 = vmov 0.0   ;;  %vm261_vm0 = vmmov 0   ;;  %s317_s0 = inlined_call_operand.vmem [shape: bf16[4,32], index: 0, kind: input, shape index: {}]   ;;  %s318_s1 = inlined_call_operand.vmem [shape: bf16[2,32], index: 1, kind: input, shape index: {}]   ;;  %s319_s2 = inlined_call_operand.vmem [shape: bf16[32,128], index: 2, kind: input, shape index: {}]   ;;  %s320_s3 = inlined_call_operand.vmem [shape: bf16[32,128], index: 3, kind: input, shape index: {}]   ;;  %s321_s4 = inlined_call_operand.vmem [shape: f32[1,128], index: 4, kind: input, shape index: {}]   ;;  %s322_s5 = inlined_call_operand.hbm [shape: f32[2,128], index: 5, kind: output, shape index: {}]  }
   0x1   :  { %v226_v0 = vld [vmem:[%s319_s2 + $0x8] sm:$0xff]   ;;  %207 = vmatprep.subr.bf16.mxu0 %v260_v1  ;;  %215 = vmatprep.subr.bf16.mxu1 %v260_v1  ;;  %v228_v3 = vld [vmem:[%s319_s2] sm:$0xff]  }
   0x2   :  { %v227_v2 = vld [vmem:[%s320_s3 + $0x8] sm:$0xff]   ;;  %208 = vmatpush3.bf16.msra.mxu0 %v226_v0  ;;  %211 = vmatprep.mubr.msk.bf16.mxu0 %vm261_vm0, %v260_v1  ;;  %v229_v4 = vld [vmem:[%s320_s3] sm:$0xff]  }
   0x3   :  { %216 = vmatpush3.bf16.msra.mxu1 %v227_v2  ;;  %209 = vmatprep.subr.bf16.mxu0 %v260_v1 }
   0x4   :  { %217 = vmatprep.subr.bf16.mxu1 %v260_v1  ;;  %219 = vmatprep.mubr.msk.bf16.mxu1 %vm261_vm0, %v260_v1 }
   0x5   :  { %10 = vsyncpa [#allocation3], 0  ;;  %v22_v5 = vld [vmem:[%s317_s0] sm:$0x3]  ;;  %vm39_vm1 = vcmask 261120   ;;  %vm91_vm2 = vcmask 1043458  }
   0x6   :  { %210 = vmatpush3.bf16.msra.mxu0 %v228_v3  ;;  %v98_v6 = vld [vmem:[%s318_s1] sm:$0x1]  ;;  %vm84_vm3 = vcmask 1041408   ;;  %s262_s0 = smov [#allocation2]  }
   0x7   :  { %218 = vmatpush3.bf16.msra.mxu1 %v229_v4  ;;  %v197_v7 = vld [vmem:[%s321_s4] ss:$0 sm:$0xff]  ;;  %s186_s1 = sshll.u32 %s262_s0, 4  ;;  %s187_s1 = int_to_ptr.vmem [resolvable:$true] %s186_s1 }
   0x8   :  { %s238_s3 = scalar_lea.vmem %s187_s1, 32  ;;  %p243_p1 = scmp.lt.s32.totalorder %s187_s1, %s187_s1 }
   0x9   :  { %212 = vmatmul.mubr.msk.bf16.vlgmr.msra.gmra.mxu0 %vm39_vm1, %v22_v5  ;;  %p239_p0 = scmp.ne.s32.totalorder %s187_s1, %s238_s3  ;;  %p244_p2 = scmp.lt.s32.totalorder %s238_s3, %s238_s3 }
   0xa   :  { %220 = vmatmul.mubr.msk.bf16.vlgmr.msra.gmra.mxu1 %vm39_vm1, %v98_v6 }
   0xb   :  { %p245_p3 = por %p244_p2, %p243_p1 }
   0xd   :  { %p246_p4 = pnand %p245_p3, %p239_p0 }
  0xc9   :  { %v77_v8 = vpop.f32.mrf.mxu0 }
  0xca   :  { %v159_v9 = vpop.f32.mrf.mxu1  ;;  %v83_v10 = vmul.f32 %v77_v8, %v77_v8 }
  0xcb   :  { %v160_v11 = vadd.f32 %v197_v7, %v159_v9  ;;  %v213_v12 = vpop.f32.mrf.mxu0 }
  0xcc   :  { %v221_v13 = vpop.f32.mrf.mxu1  ;;  %v92_v14 = vsel %vm91_vm2, %v83_v10, 0.0  ;;  %v85_v21 = vsel %vm84_vm3, %v83_v10, 0.0 }
  0xcd   :  { %93 = vadd.xlane.f32.xlu0 %v92_v14  ;;  %v80_v15 = vpop.f32.mrf.mxu0  ;;  %v165_v16 = vmul.f32 %v160_v11, %v160_v11 }
  0xce   :  { %v162_v17 = vpop.f32.mrf.mxu1 }
  0xcf   :  { %v166_v18 = vsel %vm84_vm3, %v165_v16, 0.0  ;;  %v214_v19 = vpop.f32.mrf.mxu0 }
  0xd0   :  { %167 = vadd.xlane.f32.xlu1 %v166_v18  ;;  %v222_v20 = vpop.f32.mrf.mxu1 }
  0xd1   :  { %86 = vadd.xlane.f32.xlu0 %v85_v21 }
 0x156   :  { %v94_v22 = vpop.xlane.xlu0 %93 }
 0x157   :  { %v95_v23 = vmax.f32 %v94_v22, 1e-10 }
 0x159   :  { %230 = vrsqrt.f32 %v95_v23  ;;  %v168_v24 = vpop.xlane.xlu1 %167 }
 0x15a   :  { %v169_v25 = vmax.f32 %v168_v24, 1e-10  ;;  %v87_v26 = vpop.xlane.xlu0 %86 }
 0x15b   :  { %v88_v27 = vmax.f32 %v87_v26, 1e-10 }
 0x15c   :  { %232 = vrsqrt.f32 %v169_v25 }
 0x15d   :  { %234 = vrsqrt.f32 %v88_v27 }
 0x166   :  { %v231_v28 = vpop.eup %230 }
 0x167   :  { %v97_v29 = vmul.f32 %v231_v28, %v77_v8 }
 0x169   :  { %v233_v30 = vpop.eup %232  ;;  %v173_v34 = vrot.slane %v97_v29, 2 }
 0x16a   :  { %v235_v31 = vpop.eup %234  ;;  %v171_v32 = vmul.f32 %v233_v30, %v160_v11 }
 0x16b   :  { %v90_v33 = vmul.f32 %v235_v31, %v77_v8 }
 0x16c   :  { %v176_v36 = vmul.f32 1.2, %v171_v32 }
 0x16d   :  { %v175_v35 = vadd.f32 %v173_v34, %v90_v33 }
 0x16f   :  { %v177_v37 = vadd.f32 %v176_v36, %v175_v35 }
 0x171   :  { %236 = vtanh.f32 %v177_v37 }
 0x17e   :  { %v237_v38 = vpop.eup %236 }
 0x17f   :  { %179 = vst [vmem:[#allocation2] sm:$0x3] %v237_v38 }
 0x180   :  { %249 = shalt.err (!%p246_p4)
}
 0x181   :  { %189 = dma.vmem_to_hbm [thread:$0]  %s187_s1, 32, %s322_s5, [#allocation3]  }
 0x182   :  { %258 = dma.done.wait [#allocation3], 32  }
 0x183   :  { %259 = vsyncadd [#allocation3], 4294967264 }
 0x184   :  { %193 = vsyncpa [#allocation3], 1 }

// kernel: model_forward.2
= control target key start
LH: loop header
LB: loop body
LE: loop exit
PB: predicated region body
PF: predicated region fallthrough
CT: control target
= control target key end

     0   :  { %v1883_v1 = vmov 0   ;;  %v1884_v2 = vmov 0.0   ;;  %vm142_vm0 = vcmask 261120   ;;  %v77_v45 = vlaneseq  ;;  %s2608_s2 = inlined_call_operand.vmem [shape: bf16[32,512], index: 2, kind: input, shape index: {}]   ;;  %s2609_s3 = inlined_call_operand.vmem [shape: bf16[128,512], index: 3, kind: input, shape index: {}]   ;;  %s2610_s0 = inlined_call_operand.vmem [shape: bf16[16,32], index: 0, kind: input, shape index: {}]   ;;  %s2611_s4 = inlined_call_operand.vmem [shape: f32[1,512], index: 4, kind: input, shape index: {}]   ;;  %s2612_s1 = inlined_call_operand.vmem [shape: f32[16,1], index: 1, kind: input, shape index: {}]   ;;  %s2613_s5 = inlined_call_operand.vmem [shape: bf16[128,32], index: 5, kind: input, shape index: {}]   ;;  %s2614_s6 = inlined_call_operand.vmem [shape: f32[1,32], index: 6, kind: input, shape index: {}]   ;;  %s2615_s7 = inlined_call_operand.vmem [shape: f32[16,32], index: 7, kind: output, shape index: {}]  }
   0x1   :  { %v1654_v0 = vld [vmem:[%s2608_s2 + $0x24] ss:$16 sps:$4 sm:$0xff]   ;;  %178 = vmatprep.mubr.bf16.mxu1 %v1883_v1  ;;  %427 = vmatprep.mubr.bf16.mxu0 %v1883_v1  ;;  %31 = vst [vmem:[#allocation2] sm:$0x3] %v1884_v2  ;;  %32 = vst [vmem:[#allocation3] sm:$0x3] %v1884_v2 }
   0x2   :  { %v1936_v3 = vld [vmem:[%s2609_s3 + $0xe4] ss:$16 sps:$4 sm:$0xff]   ;;  %1653 = vset.pattern.permute.xlu0 %v1883_v1  ;;  %158 = vmatprep.subr.bf16.mxu1 %v1654_v0  ;;  %v1658_v4 = vld [vmem:[%s2608_s2 + $0x20] ss:$16 sps:$4 sm:$0xff]   ;;  %v1667_v11 = vld [vmem:[%s2608_s2 + $0x28] ss:$16 sps:$4 sm:$0xff]  }
   0x3   :  { %v1945_v5 = vld [vmem:[%s2609_s3 + $0xe0] ss:$16 sps:$4 sm:$0xff]   ;;  %395 = vmatprep.subr.bf16.mxu0 %v1936_v3  ;;  %v1660_v6 = vld [vmem:[%s2608_s2 + $0x4] ss:$16 sps:$4 sm:$0xff]   ;;  %159 = vmatpush1.bf16.msra.mxu1 %v1658_v4  ;;  %v1669_v12 = vld [vmem:[%s2608_s2 + $0x2c] ss:$16 sps:$4 sm:$0xff]  }
   0x4   :  { %396 = vmatpush1.bf16.msra.mxu0 %v1945_v5  ;;  %v1955_v7 = vld [vmem:[%s2609_s3 + $0xc4] ss:$16 sps:$4 sm:$0xff]   ;;  %v1664_v8 = vld [vmem:[%s2608_s2] ss:$16 sps:$4 sm:$0xff]   ;;  %160 = vmatprep.subr.bf16.mxu1 %v1660_v6  ;;  %v1675_v15 = vld [vmem:[%s2608_s2 + $0xc] ss:$16 sps:$4 sm:$0xff]  }
   0x5   :  { %v1963_v9 = vld [vmem:[%s2609_s3 + $0xc0] ss:$16 sps:$4 sm:$0xff]   ;;  %397 = vmatprep.subr.bf16.mxu0 %v1955_v7  ;;  %v1979_v13 = vld [vmem:[%s2609_s3 + $0xa4] ss:$16 sps:$4 sm:$0xff]   ;;  %v1673_v16 = vld [vmem:[%s2608_s2 + $0x8] ss:$16 sps:$4 sm:$0xff]  }
   0x6   :  { %v1666_v10 = vld [vmem:[%s2610_s0] sm:$0xff]   ;;  %v2014_v20 = vld [vmem:[%s2609_s3 + $0xec] ss:$16 sps:$4 sm:$0xff]   ;;  %v2026_v22 = vld [vmem:[%s2609_s3 + $0xe8] ss:$16 sps:$4 sm:$0xff]   ;;  %v78_v46 = vshrl.u32 %v77_v45, 7 }
   0x7   :  { %161 = vmatpush1.bf16.msra.mxu1 %v1664_v8  ;;  %v1984_v14 = vld [vmem:[%s2609_s3 + $0xa0] ss:$16 sps:$4 sm:$0xff]   ;;  %v1997_v17 = vld [vmem:[%s2609_s3 + $0x84] ss:$16 sps:$4 sm:$0xff]   ;;  %v2038_v24 = vld [vmem:[%s2609_s3 + $0xcc] ss:$16 sps:$4 sm:$0xff]  }
   0x8   :  { %398 = vmatpush1.bf16.msra.mxu0 %v1963_v9  ;;  %201 = vmatprep.subr.bf16.mxu1 %v1669_v12  ;;  %v2003_v18 = vld [vmem:[%s2609_s3 + $0x80] ss:$16 sps:$4 sm:$0xff]   ;;  %v2009_v19 = vld [vmem:[%s2609_s3 + $0x64] ss:$16 sps:$4 sm:$0xff]   ;;  %v2051_v26 = vld [vmem:[%s2609_s3 + $0xc8] ss:$16 sps:$4 sm:$0xff]  }
   0x9   :  { %399 = vmatprep.subr.bf16.mxu0 %v1979_v13  ;;  %v2021_v21 = vld [vmem:[%s2609_s3 + $0x60] ss:$16 sps:$4 sm:$0xff]   ;;  %v2031_v23 = vld [vmem:[%s2609_s3 + $0x44] ss:$16 sps:$4 sm:$0xff]   ;;  %v2063_v28 = vld [vmem:[%s2609_s3 + $0xac] ss:$16 sps:$4 sm:$0xff]  }
   0xa   :  { %1554 = vmatmul.mubr.msk.bf16.vlgmr.msra.gmra.mxu1 %vm142_vm0, %v1666_v10  ;;  %v2044_v25 = vld [vmem:[%s2609_s3 + $0x40] ss:$16 sps:$4 sm:$0xff]   ;;  %v2058_v27 = vld [vmem:[%s2609_s3 + $0x24] ss:$16 sps:$4 sm:$0xff]   ;;  %v2074_v30 = vld [vmem:[%s2609_s3 + $0xa8] ss:$16 sps:$4 sm:$0xff]  }
   0xb   :  { %202 = vmatpush1.bf16.msra.mxu1 %v1667_v11  ;;  %221 = vmatprep.mubr.bf16.mxu1 %v1883_v1  ;;  %v2069_v29 = vld [vmem:[%s2609_s3 + $0x20] ss:$16 sps:$4 sm:$0xff]   ;;  %v2081_v31 = vld [vmem:[%s2609_s3 + $0x4] ss:$16 sps:$4 sm:$0xff]   ;;  %v2088_v32 = vld [vmem:[%s2609_s3 + $0x8c] ss:$16 sps:$4 sm:$0xff]  }
   0xc   :  { %400 = vmatpush1.bf16.msra.mxu0 %v1984_v14  ;;  %203 = vmatprep.subr.bf16.mxu1 %v1675_v15  ;;  %v2095_v33 = vld [vmem:[%s2609_s3] ss:$16 sps:$4 sm:$0xff]   ;;  %v2100_v34 = vld [vmem:[%s2609_s3 + $0x88] ss:$16 sps:$4 sm:$0xff]   ;;  %v2107_v36 = vld [vmem:[%s2609_s3 + $0x6c] ss:$16 sps:$4 sm:$0xff]  }
   0xd   :  { %401 = vmatprep.subr.bf16.mxu0 %v1997_v17  ;;  %v232_v35 = vld [vmem:[#allocation2] sm:$0x3]  ;;  %v2114_v38 = vld [vmem:[%s2609_s3 + $0x68] ss:$16 sps:$4 sm:$0xff]   ;;  %v2120_v39 = vld [vmem:[%s2609_s3 + $0x4c] ss:$16 sps:$4 sm:$0xff]  }
   0xe   :  { %v234_v37 = vpack.c.bf16 %v232_v35, %v232_v35  ;;  %v2127_v40 = vld [vmem:[%s2609_s3 + $0x48] ss:$16 sps:$4 sm:$0xff]   ;;  %v2134_v41 = vld [vmem:[%s2609_s3 + $0x2c] ss:$16 sps:$4 sm:$0xff]   ;;  %v79_v47 = vsub.s32 0, %v78_v46  ;;  %v83_v51 = vsub.s32 1, %v78_v46 }
   0xf   :  { %204 = vmatpush1.bf16.msra.mxu1 %v1673_v16  ;;  %v2142_v42 = vld [vmem:[%s2609_s3 + $0x28] ss:$16 sps:$4 sm:$0xff]   ;;  %v2149_v43 = vld [vmem:[%s2609_s3 + $0xc] ss:$16 sps:$4 sm:$0xff]   ;;  %v75_v48 = vld [vmem:[%s2611_s4] sm:$0xf] }
  0x10   :  { %402 = vmatpush1.bf16.msra.mxu0 %v2003_v18  ;;  %436 = vmatprep.subr.bf16.mxu1 %v2014_v20  ;;  %v2156_v44 = vld [vmem:[%s2609_s3 + $0x8] ss:$16 sps:$4 sm:$0xff]   ;;  %v80_v50 = vrot.slane %v75_v48, %v79_v47  ;;  %v84_v54 = vrot.slane %v75_v48, %v83_v51  ;;  %v87_v56 = vsub.s32 2, %v78_v46  ;;  %v91_v61 = vsub.s32 3, %v78_v46 }
  0x11   :  { %403 = vmatprep.subr.bf16.mxu0 %v2009_v19  ;;  %vm1885_vm1 = vmmov 0  }
  0x12   :  { %1555 = vmatmul.mubr.msk.bf16.vlgmr.msra.gmra.mxu1 %vm142_vm0, %v1666_v10  ;;  %v88_v60 = vrot.slane %v75_v48, %v87_v56  ;;  %v92_v0 = vrot.slane %v75_v48, %v91_v61 }
  0x13   :  { %437 = vmatpush1.bf16.msra.mxu1 %v2026_v22  ;;  %468 = vmatprep.mubr.bf16.mxu1 %v1883_v1 }
  0x14   :  { %404 = vmatpush1.bf16.msra.mxu0 %v2021_v21  ;;  %438 = vmatprep.subr.bf16.mxu1 %v2038_v24 }
  0x15   :  { %405 = vmatprep.subr.bf16.mxu0 %v2031_v23 }
  0x17   :  { %439 = vmatpush1.bf16.msra.mxu1 %v2051_v26 }
  0x18   :  { %406 = vmatpush1.bf16.msra.mxu0 %v2044_v25  ;;  %440 = vmatprep.subr.bf16.mxu1 %v2063_v28 }
  0x19   :  { %407 = vmatprep.subr.bf16.mxu0 %v2058_v27 }
  0x1b   :  { %441 = vmatpush1.bf16.msra.mxu1 %v2074_v30 }
  0x1c   :  { %408 = vmatpush1.bf16.msra.mxu0 %v2069_v29  ;;  %442 = vmatprep.subr.bf16.mxu1 %v2088_v32 }
  0x1d   :  { %409 = vmatprep.subr.bf16.mxu0 %v2081_v31 }
  0x1f   :  { %443 = vmatpush1.bf16.msra.mxu1 %v2100_v34 }
  0x20   :  { %410 = vmatpush1.bf16.msra.mxu0 %v2095_v33  ;;  %444 = vmatprep.subr.bf16.mxu1 %v2107_v36 }
  0x21   :  { %511 = vmatprep.subr.bf16.mxu0 %v1936_v3 }
  0x23   :  { %428 = vmatmul.mubr.bf16.vlgmr.msra.gmra.mxu0 %v234_v37  ;;  %445 = vmatpush1.bf16.msra.mxu1 %v2114_v38 }
  0x24   :  { %512 = vmatpush1.bf16.msra.mxu0 %v1945_v5  ;;  %446 = vmatprep.subr.bf16.mxu1 %v2120_v39 }
  0x25   :  { %513 = vmatprep.subr.bf16.mxu0 %v1955_v7  ;;  %543 = vmatprep.mubr.bf16.mxu0 %v1883_v1 }
  0x27   :  { %447 = vmatpush1.bf16.msra.mxu1 %v2127_v40 }
  0x28   :  { %514 = vmatpush1.bf16.msra.mxu0 %v1963_v9  ;;  %448 = vmatprep.subr.bf16.mxu1 %v2134_v41 }
  0x29   :  { %515 = vmatprep.subr.bf16.mxu0 %v1979_v13 }
  0x2b   :  { %449 = vmatpush1.bf16.msra.mxu1 %v2142_v42 }
  0x2c   :  { %516 = vmatpush1.bf16.msra.mxu0 %v1984_v14  ;;  %450 = vmatprep.subr.bf16.mxu1 %v2149_v43 }
  0x2d   :  { %517 = vmatprep.subr.bf16.mxu0 %v1997_v17 }
  0x2f   :  { %451 = vmatpush1.bf16.msra.mxu1 %v2156_v44 }
  0x30   :  { %518 = vmatpush1.bf16.msra.mxu0 %v2003_v18  ;;  %552 = vmatprep.subr.bf16.mxu1 %v2014_v20 }
  0x31   :  { %519 = vmatprep.subr.bf16.mxu0 %v2009_v19 }
  0x32   :  { %469 = vmatmul.mubr.bf16.vlgmr.msra.gmra.mxu1 %v234_v37 }
  0x33   :  { %553 = vmatpush1.bf16.msra.mxu1 %v2026_v22  ;;  %584 = vmatprep.mubr.bf16.mxu1 %v1883_v1 }
  0x34   :  { %520 = vmatpush1.bf16.msra.mxu0 %v2021_v21  ;;  %554 = vmatprep.subr.bf16.mxu1 %v2038_v24 }
  0x35   :  { %521 = vmatprep.subr.bf16.mxu0 %v2031_v23 }
  0x37   :  { %555 = vmatpush1.bf16.msra.mxu1 %v2051_v26 }
  0x38   :  { %522 = vmatpush1.bf16.msra.mxu0 %v2044_v25  ;;  %556 = vmatprep.subr.bf16.mxu1 %v2063_v28 }
  0x39   :  { %523 = vmatprep.subr.bf16.mxu0 %v2058_v27 }
  0x3b   :  { %557 = vmatpush1.bf16.msra.mxu1 %v2074_v30 }
  0x3c   :  { %524 = vmatpush1.bf16.msra.mxu0 %v2069_v29  ;;  %558 = vmatprep.subr.bf16.mxu1 %v2088_v32 }
  0x3d   :  { %525 = vmatprep.subr.bf16.mxu0 %v2081_v31 }
  0x3f   :  { %559 = vmatpush1.bf16.msra.mxu1 %v2100_v34 }
  0x40   :  { %526 = vmatpush1.bf16.msra.mxu0 %v2095_v33  ;;  %560 = vmatprep.subr.bf16.mxu1 %v2107_v36 }
  0x41   :  { %642 = vmatprep.subr.bf16.mxu0 %v1936_v3 }
  0x43   :  { %561 = vmatpush1.bf16.msra.mxu1 %v2114_v38 }
  0x44   :  { %562 = vmatprep.subr.bf16.mxu1 %v2120_v39 }
  0x47   :  { %563 = vmatpush1.bf16.msra.mxu1 %v2127_v40 }
  0x48   :  { %564 = vmatprep.subr.bf16.mxu1 %v2134_v41 }
  0x4b   :  { %565 = vmatpush1.bf16.msra.mxu1 %v2142_v42 }
  0x4c   :  { %566 = vmatprep.subr.bf16.mxu1 %v2149_v43 }
  0x4f   :  { %567 = vmatpush1.bf16.msra.mxu1 %v2156_v44 }
  0x50   :  { %683 = vmatprep.subr.bf16.mxu1 %v2014_v20 }
  0xca   :  { %v180_v49 = vpop.f32.mrf.mxu1 }
  0xcb   :  { %v2201_v10 = vadd.f32 %v180_v49, %v80_v50 }
  0xcc   :  { %v182_v52 = vpop.f32.mrf.mxu1 }
  0xcd   :  { %v2203_v12 = vadd.f32 %v182_v52, %v84_v54 }
  0xce   :  { %v184_v53 = vpop.f32.mrf.mxu1 }
  0xcf   :  { %v2193_v55 = vadd.f32 %v184_v53, %v80_v50 }
  0xd0   :  { %v186_v57 = vpop.f32.mrf.mxu1 }
  0xd1   :  { %v2195_v58 = vadd.f32 %v186_v57, %v84_v54 }
  0xd2   :  { %v223_v59 = vpop.f32.mrf.mxu1 }
  0xd3   :  { %v2207_v48 = vadd.f32 %v223_v59, %v88_v60 }
  0xd4   :  { %v225_v62 = vpop.f32.mrf.mxu1 }
  0xd5   :  { %v2210_v53 = vadd.f32 %v225_v62, %v92_v0 }
  0xd6   :  { %v227_v63 = vpop.f32.mrf.mxu1 }
  0xd7   :  { %v2197_v4 = vadd.f32 %v227_v63, %v88_v60  ;;  %v233_v60 = vld [vmem:[#allocation3] sm:$0x3] }
  0xd8   :  { %v229_v6 = vpop.f32.mrf.mxu1 }
  0xd9   :  { %v2199_v8 = vadd.f32 %v229_v6, %v92_v0 }
  0xe3   :  { %v429_v11 = vpop.f32.mrf.mxu0 }
  0xe4   :  { %v477_v15 = vadd.f32 %v429_v11, %v2201_v10 }
  0xe5   :  { %v431_v16 = vpop.f32.mrf.mxu0 }
  0xe6   :  { %v1588_v35 = vmul.f32 -1.442695, %v477_v15  ;;  %v478_v37 = vadd.f32 %v431_v16, %v2203_v12 }
  0xe7   :  { %v433_v45 = vpop.f32.mrf.mxu0 }
  0xe8   :  { %1723 = vpow2.f32 %v1588_v35  ;;  %v1589_v46 = vmul.f32 -1.442695, %v478_v37 }
  0xe9   :  { %v434_v47 = vpop.f32.mrf.mxu0 }
  0xea   :  { %1725 = vpow2.f32 %v1589_v46 }
  0xf2   :  { %v470_v51 = vpop.f32.mrf.mxu1 }
  0xf3   :  { %v479_v49 = vadd.f32 %v470_v51, %v2207_v48 }
  0xf4   :  { %v472_v52 = vpop.f32.mrf.mxu1 }
  0xf5   :  { %v1724_v50 = vpop.eup %1723  ;;  %v1590_v56 = vmul.f32 -1.442695, %v479_v49  ;;  %v480_v61 = vadd.f32 %v472_v52, %v2210_v53 }
  0xf6   :  { %v490_v54 = vadd.f32 1.0, %v1724_v50  ;;  %v474_v63 = vpop.f32.mrf.mxu1 }
  0xf7   :  { %v1726_v57 = vpop.eup %1725 }
  0xf8   :  { %1727 = vrcp.f32 %v490_v54  ;;  %v491_v6 = vadd.f32 1.0, %v1726_v57  ;;  %v475_v11 = vpop.f32.mrf.mxu1 }
  0xf9   :  { %1729 = vpow2.f32 %v1590_v56 }
  0xfa   :  { %1731 = vrcp.f32 %v491_v6 }
  0xfb   :  { %1733 = vtanh.f32 %v480_v61 }
 0x105   :  { %v1728_v59 = vpop.eup %1727 }
 0x106   :  { %v1730_v15 = vpop.eup %1729 }
 0x107   :  { %v1732_v16 = vpop.eup %1731  ;;  %v492_v62 = vadd.f32 1.0, %v1730_v15 }
 0x108   :  { %v1734_v35 = vpop.eup %1733  ;;  %v500_v0 = vmul.f32 %v1732_v16, %v233_v60 }
 0x109   :  { %v501_v37 = vmul.f32 %v1734_v35, %v1728_v59  ;;  %1735 = vrcp.f32 %v492_v62 }
 0x10b   :  { %v502_v45 = vadd.f32 %v501_v37, %v500_v0 }
 0x10d   :  { %1737 = vtanh.f32 %v502_v45  ;;  %505 = vst [vmem:[#allocation3] sm:$0x3] %v502_v45 }
 0x116   :  { %v1736_v46 = vpop.eup %1735 }
 0x11a   :  { %v1738_v47 = vpop.eup %1737 }
 0x11b   :  { %v504_v51 = vmul.f32 %v1738_v47, %v1736_v46 }
 0x11d   :  { %506 = vst [vmem:[#allocation2] sm:$0x3] %v504_v51  ;;  %507 = vst [vmem:[#allocation4] sm:$0x3] %v504_v51 }
 0x124   :  { %v508_v49 = vld [vmem:[#allocation2] sm:$0x3] }
 0x125   :  { %v510_v50 = vpack.c.bf16 %v508_v49, %v508_v49 }
 0x127   :  { %544 = vmatmul.mubr.bf16.vlgmr.msra.gmra.mxu0 %v510_v50  ;;  %585 = vmatmul.mubr.bf16.vlgmr.msra.gmra.mxu1 %v510_v50 }
 0x128   :  { %643 = vmatpush1.bf16.msra.mxu0 %v1945_v5  ;;  %684 = vmatpush1.bf16.msra.mxu1 %v2026_v22 }
 0x129   :  { %644 = vmatprep.subr.bf16.mxu0 %v1955_v7  ;;  %685 = vmatprep.subr.bf16.mxu1 %v2038_v24 }
 0x12a   :  { %674 = vmatprep.mubr.bf16.mxu0 %v1883_v1  ;;  %715 = vmatprep.mubr.bf16.mxu1 %v1883_v1 }
 0x12c   :  { %645 = vmatpush1.bf16.msra.mxu0 %v1963_v9  ;;  %686 = vmatpush1.bf16.msra.mxu1 %v2051_v26 }
 0x12d   :  { %646 = vmatprep.subr.bf16.mxu0 %v1979_v13  ;;  %687 = vmatprep.subr.bf16.mxu1 %v2063_v28 }
 0x130   :  { %647 = vmatpush1.bf16.msra.mxu0 %v1984_v14  ;;  %688 = vmatpush1.bf16.msra.mxu1 %v2074_v30 }
 0x131   :  { %648 = vmatprep.subr.bf16.mxu0 %v1997_v17  ;;  %689 = vmatprep.subr.bf16.mxu1 %v2088_v32 }
 0x134   :  { %649 = vmatpush1.bf16.msra.mxu0 %v2003_v18  ;;  %690 = vmatpush1.bf16.msra.mxu1 %v2100_v34 }
 0x135   :  { %650 = vmatprep.subr.bf16.mxu0 %v2009_v19  ;;  %691 = vmatprep.subr.bf16.mxu1 %v2107_v36 }
 0x138   :  { %651 = vmatpush1.bf16.msra.mxu0 %v2021_v21  ;;  %692 = vmatpush1.bf16.msra.mxu1 %v2114_v38 }
 0x139   :  { %652 = vmatprep.subr.bf16.mxu0 %v2031_v23  ;;  %693 = vmatprep.subr.bf16.mxu1 %v2120_v39 }
 0x13c   :  { %653 = vmatpush1.bf16.msra.mxu0 %v2044_v25  ;;  %694 = vmatpush1.bf16.msra.mxu1 %v2127_v40 }
 0x13d   :  { %654 = vmatprep.subr.bf16.mxu0 %v2058_v27  ;;  %695 = vmatprep.subr.bf16.mxu1 %v2134_v41 }
 0x140   :  { %655 = vmatpush1.bf16.msra.mxu0 %v2069_v29  ;;  %696 = vmatpush1.bf16.msra.mxu1 %v2142_v42 }
 0x141   :  { %656 = vmatprep.subr.bf16.mxu0 %v2081_v31  ;;  %697 = vmatprep.subr.bf16.mxu1 %v2149_v43 }
 0x144   :  { %657 = vmatpush1.bf16.msra.mxu0 %v2095_v33  ;;  %698 = vmatpush1.bf16.msra.mxu1 %v2156_v44 }
 0x145   :  { %773 = vmatprep.subr.bf16.mxu0 %v1936_v3  ;;  %814 = vmatprep.subr.bf16.mxu1 %v2014_v20 }
 0x1e7   :  { %v545_v52 = vpop.f32.mrf.mxu0  ;;  %v586_v54 = vpop.f32.mrf.mxu1 }
 0x1e8   :  { %v597_v56 = vrot.slane %v545_v52, 6  ;;  %v599_v0 = vrot.slane %v586_v54, 6 }
 0x1e9   :  { %v547_v57 = vpop.f32.mrf.mxu0  ;;  %v588_v61 = vpop.f32.mrf.mxu1 }
 0x1ea   :  { %v605_v63 = vadd.f32 %v597_v56, %v2201_v10  ;;  %v598_v6 = vrot.slane %v547_v57, 6  ;;  %v607_v37 = vadd.f32 %v599_v0, %v2207_v48  ;;  %v600_v45 = vrot.slane %v588_v61, 6  ;;  %v509_v56 = vld [vmem:[#allocation3] sm:$0x3] }
 0x1eb   :  { %v549_v11 = vpop.f32.mrf.mxu0  ;;  %v590_v59 = vpop.f32.mrf.mxu1 }
 0x1ec   :  { %v1591_v60 = vmul.f32 -1.442695, %v605_v63  ;;  %v606_v15 = vadd.f32 %v598_v6, %v2203_v12  ;;  %v1593_v46 = vmul.f32 -1.442695, %v607_v37  ;;  %v608_v51 = vadd.f32 %v600_v45, %v2210_v53  ;;  %v1412_v45 = vld [vmem:[%s2612_s1] sm:$0xff] }
 0x1ed   :  { %v550_v16 = vpop.f32.mrf.mxu0  ;;  %v591_v35 = vpop.f32.mrf.mxu1  ;;  %v629_v11 = vrot.slane %v509_v56, 6  ;;  %1416 = vperm.xlu0 %1653, %v1412_v45  }
 0x1ee   :  { %1739 = vpow2.f32 %v1591_v60  ;;  %v1592_v62 = vmul.f32 -1.442695, %v606_v15 }
 0x1f0   :  { %1741 = vpow2.f32 %v1592_v62 }
 0x1f1   :  { %1743 = vpow2.f32 %v1593_v46 }
 0x1fb   :  { %v1740_v47 = vpop.eup %1739 }
 0x1fc   :  { %v618_v49 = vadd.f32 1.0, %v1740_v47 }
 0x1fd   :  { %v1742_v50 = vpop.eup %1741 }
 0x1fe   :  { %1745 = vrcp.f32 %v618_v49  ;;  %v619_v52 = vadd.f32 1.0, %v1742_v50  ;;  %v1744_v57 = vpop.eup %1743 }
 0x1ff   :  { %1747 = vtanh.f32 %v608_v51  ;;  %v620_v59 = vadd.f32 1.0, %v1744_v57 }
 0x200   :  { %1749 = vrcp.f32 %v619_v52 }
 0x201   :  { %1751 = vrcp.f32 %v620_v59 }
 0x20b   :  { %v1746_v63 = vpop.eup %1745 }
 0x20c   :  { %v1748_v6 = vpop.eup %1747 }
 0x20d   :  { %v1750_v54 = vpop.eup %1749  ;;  %v632_v61 = vmul.f32 %v1748_v6, %v1746_v63 }
 0x20e   :  { %v631_v60 = vmul.f32 %v1750_v54, %v629_v11  ;;  %v1752_v16 = vpop.eup %1751 }
 0x210   :  { %v633_v15 = vadd.f32 %v632_v61, %v631_v60 }
 0x212   :  { %1753 = vtanh.f32 %v633_v15  ;;  %636 = vst [vmem:[#allocation3 - $0x2] sm:$0xc] %v633_v15 }
 0x21f   :  { %v1754_v35 = vpop.eup %1753 }
 0x220   :  { %v635_v62 = vmul.f32 %v1754_v35, %v1752_v16 }
 0x222   :  { %637 = vst [vmem:[#allocation2 - $0x2] sm:$0xc] %v635_v62  ;;  %638 = vst [vmem:[#allocation4] sm:$0xc] %v635_v62 }
 0x229   :  { %v639_v0 = vld [vmem:[#allocation2] sm:$0x3] }
 0x22a   :  { %v641_v37 = vpack.c.bf16 %v639_v0, %v639_v0 }
 0x22c   :  { %675 = vmatmul.mubr.bf16.vlgmr.msra.gmra.mxu0 %v641_v37  ;;  %716 = vmatmul.mubr.bf16.vlgmr.msra.gmra.mxu1 %v641_v37 }
 0x22d   :  { %774 = vmatpush1.bf16.msra.mxu0 %v1945_v5  ;;  %815 = vmatpush1.bf16.msra.mxu1 %v2026_v22 }
 0x22e   :  { %775 = vmatprep.subr.bf16.mxu0 %v1955_v7  ;;  %816 = vmatprep.subr.bf16.mxu1 %v2038_v24 }
 0x22f   :  { %805 = vmatprep.mubr.bf16.mxu0 %v1883_v1  ;;  %846 = vmatprep.mubr.bf16.mxu1 %v1883_v1 }
 0x231   :  { %776 = vmatpush1.bf16.msra.mxu0 %v1963_v9  ;;  %817 = vmatpush1.bf16.msra.mxu1 %v2051_v26 }
 0x232   :  { %777 = vmatprep.subr.bf16.mxu0 %v1979_v13  ;;  %818 = vmatprep.subr.bf16.mxu1 %v2063_v28 }
 0x235   :  { %778 = vmatpush1.bf16.msra.mxu0 %v1984_v14  ;;  %819 = vmatpush1.bf16.msra.mxu1 %v2074_v30 }
 0x236   :  { %779 = vmatprep.subr.bf16.mxu0 %v1997_v17  ;;  %820 = vmatprep.subr.bf16.mxu1 %v2088_v32 }
 0x239   :  { %780 = vmatpush1.bf16.msra.mxu0 %v2003_v18  ;;  %821 = vmatpush1.bf16.msra.mxu1 %v2100_v34 }
 0x23a   :  { %781 = vmatprep.subr.bf16.mxu0 %v2009_v19  ;;  %822 = vmatprep.subr.bf16.mxu1 %v2107_v36 }
 0x23d   :  { %782 = vmatpush1.bf16.msra.mxu0 %v2021_v21  ;;  %823 = vmatpush1.bf16.msra.mxu1 %v2114_v38 }
 0x23e   :  { %783 = vmatprep.subr.bf16.mxu0 %v2031_v23  ;;  %824 = vmatprep.subr.bf16.mxu1 %v2120_v39 }
 0x241   :  { %784 = vmatpush1.bf16.msra.mxu0 %v2044_v25  ;;  %825 = vmatpush1.bf16.msra.mxu1 %v2127_v40 }
 0x242   :  { %785 = vmatprep.subr.bf16.mxu0 %v2058_v27  ;;  %826 = vmatprep.subr.bf16.mxu1 %v2134_v41 }
 0x245   :  { %786 = vmatpush1.bf16.msra.mxu0 %v2069_v29  ;;  %827 = vmatpush1.bf16.msra.mxu1 %v2142_v42 }
 0x246   :  { %787 = vmatprep.subr.bf16.mxu0 %v2081_v31  ;;  %828 = vmatprep.subr.bf16.mxu1 %v2149_v43 }
 0x249   :  { %788 = vmatpush1.bf16.msra.mxu0 %v2095_v33  ;;  %829 = vmatpush1.bf16.msra.mxu1 %v2156_v44 }
 0x24a   :  { %904 = vmatprep.subr.bf16.mxu0 %v1936_v3  ;;  %945 = vmatprep.subr.bf16.mxu1 %v2014_v20 }
 0x2ec   :  { %v676_v46 = vpop.f32.mrf.mxu0  ;;  %v717_v47 = vpop.f32.mrf.mxu1 }
 0x2ed   :  { %v728_v51 = vrot.slane %v676_v46, 4  ;;  %v730_v61 = vrot.slane %v717_v47, 4 }
 0x2ee   :  { %v678_v49 = vpop.f32.mrf.mxu0  ;;  %v719_v50 = vpop.f32.mrf.mxu1 }
 0x2ef   :  { %v736_v52 = vadd.f32 %v728_v51, %v2201_v10  ;;  %v729_v56 = vrot.slane %v678_v49, 4  ;;  %v738_v15 = vadd.f32 %v730_v61, %v2207_v48  ;;  %v731_v16 = vrot.slane %v719_v50, 4  ;;  %v640_v51 = vld [vmem:[#allocation3] sm:$0x3] }
 0x2f0   :  { %v680_v57 = vpop.f32.mrf.mxu0  ;;  %v721_v63 = vpop.f32.mrf.mxu1 }
 0x2f1   :  { %v1594_v6 = vmul.f32 -1.442695, %v736_v52  ;;  %v737_v11 = vadd.f32 %v729_v56, %v2203_v12  ;;  %v1596_v35 = vmul.f32 -1.442695, %v738_v15  ;;  %v739_v0 = vadd.f32 %v731_v16, %v2210_v53 }
 0x2f2   :  { %v681_v54 = vpop.f32.mrf.mxu0  ;;  %v722_v59 = vpop.f32.mrf.mxu1  ;;  %v760_v57 = vrot.slane %v640_v51, 4 }
 0x2f3   :  { %1755 = vpow2.f32 %v1594_v6  ;;  %v1595_v60 = vmul.f32 -1.442695, %v737_v11 }
 0x2f5   :  { %1757 = vpow2.f32 %v1595_v60 }
 0x2f6   :  { %1759 = vpow2.f32 %v1596_v35 }
 0x300   :  { %v1756_v62 = vpop.eup %1755 }
 0x301   :  { %v749_v37 = vadd.f32 1.0, %v1756_v62 }
 0x302   :  { %v1758_v45 = vpop.eup %1757 }
 0x303   :  { %1761 = vrcp.f32 %v749_v37  ;;  %v750_v46 = vadd.f32 1.0, %v1758_v45  ;;  %v1760_v49 = vpop.eup %1759 }
 0x304   :  { %1763 = vtanh.f32 %v739_v0  ;;  %v751_v63 = vadd.f32 1.0, %v1760_v49 }
 0x305   :  { %1765 = vrcp.f32 %v750_v46 }
 0x306   :  { %1767 = vrcp.f32 %v751_v63 }
 0x310   :  { %v1762_v52 = vpop.eup %1761 }
 0x311   :  { %v1764_v56 = vpop.eup %1763 }
 0x312   :  { %v1766_v47 = vpop.eup %1765  ;;  %v763_v50 = vmul.f32 %v1764_v56, %v1762_v52 }
 0x313   :  { %v762_v6 = vmul.f32 %v1766_v47, %v760_v57  ;;  %v1768_v54 = vpop.eup %1767 }
 0x315   :  { %v764_v11 = vadd.f32 %v763_v50, %v762_v6 }
 0x317   :  { %1769 = vtanh.f32 %v764_v11  ;;  %767 = vst [vmem:[#allocation3 - $0x4] sm:$0x30] %v764_v11 }
 0x324   :  { %v1770_v59 = vpop.eup %1769 }
 0x325   :  { %v766_v60 = vmul.f32 %v1770_v59, %v1768_v54 }
 0x327   :  { %768 = vst [vmem:[#allocation2 - $0x4] sm:$0x30] %v766_v60  ;;  %769 = vst [vmem:[#allocation4] sm:$0x30] %v766_v60 }
 0x32e   :  { %v770_v61 = vld [vmem:[#allocation2] sm:$0x3] }
 0x32f   :  { %v772_v15 = vpack.c.bf16 %v770_v61, %v770_v61 }
 0x331   :  { %806 = vmatmul.mubr.bf16.vlgmr.msra.gmra.mxu0 %v772_v15  ;;  %847 = vmatmul.mubr.bf16.vlgmr.msra.gmra.mxu1 %v772_v15 }
 0x332   :  { %905 = vmatpush1.bf16.msra.mxu0 %v1945_v5  ;;  %946 = vmatpush1.bf16.msra.mxu1 %v2026_v22 }
 0x333   :  { %906 = vmatprep.subr.bf16.mxu0 %v1955_v7  ;;  %947 = vmatprep.subr.bf16.mxu1 %v2038_v24 }
 0x334   :  { %936 = vmatprep.mubr.bf16.mxu0 %v1883_v1  ;;  %977 = vmatprep.mubr.bf16.mxu1 %v1883_v1 }
 0x336   :  { %907 = vmatpush1.bf16.msra.mxu0 %v1963_v9  ;;  %948 = vmatpush1.bf16.msra.mxu1 %v2051_v26 }
 0x337   :  { %908 = vmatprep.subr.bf16.mxu0 %v1979_v13  ;;  %949 = vmatprep.subr.bf16.mxu1 %v2063_v28 }
 0x33a   :  { %909 = vmatpush1.bf16.msra.mxu0 %v1984_v14  ;;  %950 = vmatpush1.bf16.msra.mxu1 %v2074_v30 }
 0x33b   :  { %910 = vmatprep.subr.bf16.mxu0 %v1997_v17  ;;  %951 = vmatprep.subr.bf16.mxu1 %v2088_v32 }
 0x33e   :  { %911 = vmatpush1.bf16.msra.mxu0 %v2003_v18  ;;  %952 = vmatpush1.bf16.msra.mxu1 %v2100_v34 }
 0x33f   :  { %912 = vmatprep.subr.bf16.mxu0 %v2009_v19  ;;  %953 = vmatprep.subr.bf16.mxu1 %v2107_v36 }
 0x342   :  { %913 = vmatpush1.bf16.msra.mxu0 %v2021_v21  ;;  %954 = vmatpush1.bf16.msra.mxu1 %v2114_v38 }
 0x343   :  { %914 = vmatprep.subr.bf16.mxu0 %v2031_v23  ;;  %955 = vmatprep.subr.bf16.mxu1 %v2120_v39 }
 0x346   :  { %915 = vmatpush1.bf16.msra.mxu0 %v2044_v25  ;;  %956 = vmatpush1.bf16.msra.mxu1 %v2127_v40 }
 0x347   :  { %916 = vmatprep.subr.bf16.mxu0 %v2058_v27  ;;  %957 = vmatprep.subr.bf16.mxu1 %v2134_v41 }
 0x34a   :  { %917 = vmatpush1.bf16.msra.mxu0 %v2069_v29  ;;  %958 = vmatpush1.bf16.msra.mxu1 %v2142_v42 }
 0x34b   :  { %918 = vmatprep.subr.bf16.mxu0 %v2081_v31  ;;  %959 = vmatprep.subr.bf16.mxu1 %v2149_v43 }
 0x34e   :  { %919 = vmatpush1.bf16.msra.mxu0 %v2095_v33  ;;  %960 = vmatpush1.bf16.msra.mxu1 %v2156_v44 }
 0x34f   :  { %1020 = vmatprep.subr.bf16.mxu0 %v1936_v3  ;;  %1061 = vmatprep.subr.bf16.mxu1 %v2014_v20 }
 0x3f1   :  { %v807_v16 = vpop.f32.mrf.mxu0  ;;  %v848_v35 = vpop.f32.mrf.mxu1 }
 0x3f2   :  { %v859_v62 = vrot.slane %v807_v16, 2  ;;  %v861_v3 = vrot.slane %v848_v35, 2 }
 0x3f3   :  { %v809_v0 = vpop.f32.mrf.mxu0  ;;  %v850_v37 = vpop.f32.mrf.mxu1 }
 0x3f4   :  { %v867_v45 = vadd.f32 %v859_v62, %v2201_v10  ;;  %v860_v46 = vrot.slane %v809_v0, 2  ;;  %v869_v6 = vadd.f32 %v861_v3, %v2207_v48  ;;  %v862_v50 = vrot.slane %v850_v37, 2 }
 0x3f5   :  { %v811_v51 = vpop.f32.mrf.mxu0  ;;  %v852_v49 = vpop.f32.mrf.mxu1 }
 0x3f6   :  { %v1597_v52 = vmul.f32 -1.442695, %v867_v45  ;;  %v868_v56 = vadd.f32 %v860_v46, %v2203_v12  ;;  %v1599_v11 = vmul.f32 -1.442695, %v869_v6  ;;  %v870_v59 = vadd.f32 %v862_v50, %v2210_v53  ;;  %v771_v12 = vld [vmem:[#allocation3] sm:$0x3] }
 0x3f7   :  { %v812_v57 = vpop.f32.mrf.mxu0  ;;  %v853_v47 = vpop.f32.mrf.mxu1  ;;  %v891_v0 = vrot.slane %v771_v12, 2 }
 0x3f8   :  { %1771 = vpow2.f32 %v1597_v52  ;;  %v1598_v63 = vmul.f32 -1.442695, %v868_v56 }
 0x3fa   :  { %1773 = vpow2.f32 %v1598_v63 }
 0x3fb   :  { %1775 = vpow2.f32 %v1599_v11 }
 0x405   :  { %v1772_v54 = vpop.eup %1771 }
 0x406   :  { %v880_v10 = vadd.f32 1.0, %v1772_v54 }
 0x407   :  { %v1774_v60 = vpop.eup %1773 }
 0x408   :  { %1777 = vrcp.f32 %v880_v10  ;;  %v881_v61 = vadd.f32 1.0, %v1774_v60  ;;  %v1776_v15 = vpop.eup %1775 }
 0x409   :  { %1779 = vtanh.f32 %v870_v59  ;;  %v882_v45 = vadd.f32 1.0, %v1776_v15 }
 0x40a   :  { %1781 = vrcp.f32 %v881_v61 }
 0x40b   :  { %1783 = vrcp.f32 %v882_v45  ;;  %v2382_v45 = vld [vmem:[%s2609_s3 + $0xe8] ss:$16 sps:$4 sm:$0xff]  }
 0x415   :  { %v1778_v16 = vpop.eup %1777 }
 0x416   :  { %v1780_v62 = vpop.eup %1779 }
 0x417   :  { %v1782_v35 = vpop.eup %1781  ;;  %v894_v37 = vmul.f32 %v1780_v62, %v1778_v16 }
 0x418   :  { %v893_v48 = vmul.f32 %v1782_v35, %v891_v0  ;;  %v1784_v53 = vpop.eup %1783  ;;  %v2376_v35 = vld [vmem:[%s2609_s3 + $0xe0] ss:$16 sps:$4 sm:$0xff]  }
 0x41a   :  { %v895_v46 = vadd.f32 %v894_v37, %v893_v48  ;;  %v2388_v48 = vld [vmem:[%s2609_s3 + $0xc4] ss:$16 sps:$4 sm:$0xff]   ;;  %v2394_v37 = vld [vmem:[%s2609_s3 + $0xcc] ss:$16 sps:$4 sm:$0xff]  }
 0x41c   :  { %1785 = vtanh.f32 %v895_v46  ;;  %898 = vst [vmem:[#allocation3 - $0x6] sm:$0xc0] %v895_v46  ;;  %v2402_v46 = vld [vmem:[%s2609_s3 + $0xc0] ss:$16 sps:$4 sm:$0xff]  }
 0x423   :  { %v902_v59 = vld [vmem:[#allocation3] sm:$0x3] }
 0x429   :  { %v1786_v51 = vpop.eup %1785 }
 0x42a   :  { %v897_v49 = vmul.f32 %v1786_v51, %v1784_v53  ;;  %v2409_v53 = vld [vmem:[%s2609_s3 + $0xa4] ss:$16 sps:$4 sm:$0xff]   ;;  %v2416_v51 = vld [vmem:[%s2609_s3 + $0xa0] ss:$16 sps:$4 sm:$0xff]  }
 0x42c   :  { %899 = vst [vmem:[#allocation2 - $0x6] sm:$0xc0] %v897_v49  ;;  %900 = vst [vmem:[#allocation4] sm:$0xc0] %v897_v49 }
 0x433   :  { %v901_v52 = vld [vmem:[#allocation2] sm:$0x3] }
 0x434   :  { %v903_v56 = vpack.c.bf16 %v901_v52, %v901_v52 }
 0x436   :  { %937 = vmatmul.mubr.bf16.vlgmr.msra.gmra.mxu0 %v903_v56  ;;  %978 = vmatmul.mubr.bf16.vlgmr.msra.gmra.mxu1 %v903_v56 }
 0x437   :  { %1021 = vmatpush1.bf16.msra.mxu0 %v1945_v5  ;;  %1062 = vmatpush1.bf16.msra.mxu1 %v2026_v22  ;;  %v2365_v5 = vld [vmem:[%s2609_s3 + $0xe4] ss:$16 sps:$4 sm:$0xff]  }
 0x438   :  { %1022 = vmatprep.subr.bf16.mxu0 %v1955_v7  ;;  %1063 = vmatprep.subr.bf16.mxu1 %v2038_v24 }
 0x439   :  { %1052 = vmatprep.mubr.bf16.mxu0 %v1883_v1  ;;  %1093 = vmatprep.mubr.bf16.mxu1 %v1883_v1 }
 0x43b   :  { %1023 = vmatpush1.bf16.msra.mxu0 %v1963_v9  ;;  %1064 = vmatpush1.bf16.msra.mxu1 %v2051_v26 }
 0x43c   :  { %1024 = vmatprep.subr.bf16.mxu0 %v1979_v13  ;;  %1065 = vmatprep.subr.bf16.mxu1 %v2063_v28 }
 0x43f   :  { %1025 = vmatpush1.bf16.msra.mxu0 %v1984_v14  ;;  %1066 = vmatpush1.bf16.msra.mxu1 %v2074_v30 }
 0x440   :  { %1026 = vmatprep.subr.bf16.mxu0 %v1997_v17  ;;  %1067 = vmatprep.subr.bf16.mxu1 %v2088_v32 }
 0x443   :  { %1027 = vmatpush1.bf16.msra.mxu0 %v2003_v18  ;;  %1068 = vmatpush1.bf16.msra.mxu1 %v2100_v34 }
 0x444   :  { %1028 = vmatprep.subr.bf16.mxu0 %v2009_v19  ;;  %1069 = vmatprep.subr.bf16.mxu1 %v2107_v36 }
 0x447   :  { %1029 = vmatpush1.bf16.msra.mxu0 %v2021_v21  ;;  %1070 = vmatpush1.bf16.msra.mxu1 %v2114_v38 }
 0x448   :  { %1030 = vmatprep.subr.bf16.mxu0 %v2031_v23  ;;  %1071 = vmatprep.subr.bf16.mxu1 %v2120_v39 }
 0x44b   :  { %1031 = vmatpush1.bf16.msra.mxu0 %v2044_v25  ;;  %1072 = vmatpush1.bf16.msra.mxu1 %v2127_v40 }
 0x44c   :  { %1032 = vmatprep.subr.bf16.mxu0 %v2058_v27  ;;  %1073 = vmatprep.subr.bf16.mxu1 %v2134_v41 }
 0x44f   :  { %1033 = vmatpush1.bf16.msra.mxu0 %v2069_v29  ;;  %1074 = vmatpush1.bf16.msra.mxu1 %v2142_v42 }
 0x450   :  { %1034 = vmatprep.subr.bf16.mxu0 %v2081_v31  ;;  %1075 = vmatprep.subr.bf16.mxu1 %v2149_v43 }
 0x453   :  { %1035 = vmatpush1.bf16.msra.mxu0 %v2095_v33  ;;  %1076 = vmatpush1.bf16.msra.mxu1 %v2156_v44 }
 0x454   :  { %1151 = vmatprep.subr.bf16.mxu0 %v2365_v5  ;;  %1192 = vmatprep.subr.bf16.mxu1 %v2014_v20 }
 0x4f6   :  { %v938_v7 = vpop.f32.mrf.mxu0  ;;  %v979_v9 = vpop.f32.mrf.mxu1 }
 0x4f7   :  { %v986_v13 = vadd.f32 %v938_v7, %v2193_v55  ;;  %v988_v27 = vadd.f32 %v979_v9, %v2197_v4 }
 0x4f8   :  { %v940_v14 = vpop.f32.mrf.mxu0  ;;  %v981_v17 = vpop.f32.mrf.mxu1 }
 0x4f9   :  { %v1600_v18 = vmul.f32 -1.442695, %v986_v13  ;;  %v987_v19 = vadd.f32 %v940_v14, %v2195_v58  ;;  %v1602_v29 = vmul.f32 -1.442695, %v988_v27  ;;  %v989_v31 = vadd.f32 %v981_v17, %v2199_v8 }
 0x4fa   :  { %v942_v21 = vpop.f32.mrf.mxu0  ;;  %v983_v22 = vpop.f32.mrf.mxu1 }
 0x4fb   :  { %1787 = vpow2.f32 %v1600_v18  ;;  %v1601_v23 = vmul.f32 -1.442695, %v987_v19 }
 0x4fc   :  { %v943_v24 = vpop.f32.mrf.mxu0  ;;  %v984_v25 = vpop.f32.mrf.mxu1 }
 0x4fd   :  { %1789 = vpow2.f32 %v1601_v23 }
 0x4fe   :  { %1791 = vpow2.f32 %v1602_v29 }
 0x508   :  { %v1788_v20 = vpop.eup %1787 }
 0x509   :  { %v999_v57 = vadd.f32 1.0, %v1788_v20 }
 0x50a   :  { %v1790_v47 = vpop.eup %1789 }
 0x50b   :  { %1793 = vrcp.f32 %v999_v57  ;;  %v1000_v63 = vadd.f32 1.0, %v1790_v47  ;;  %v1792_v3 = vpop.eup %1791 }
 0x50c   :  { %1795 = vtanh.f32 %v989_v31  ;;  %v1001_v54 = vadd.f32 1.0, %v1792_v3 }
 0x50d   :  { %1797 = vrcp.f32 %v1000_v63 }
 0x50e   :  { %1799 = vrcp.f32 %v1001_v54 }
 0x518   :  { %v1794_v6 = vpop.eup %1793 }
 0x519   :  { %v1796_v50 = vpop.eup %1795 }
 0x51a   :  { %v1798_v11 = vpop.eup %1797  ;;  %v1010_v60 = vmul.f32 %v1796_v50, %v1794_v6 }
 0x51b   :  { %v1009_v10 = vmul.f32 %v1798_v11, %v902_v59  ;;  %v1800_v12 = vpop.eup %1799 }
 0x51d   :  { %v1011_v61 = vadd.f32 %v1010_v60, %v1009_v10 }
 0x51f   :  { %1801 = vtanh.f32 %v1011_v61  ;;  %1014 = vst [vmem:[#allocation3] sm:$0x3] %v1011_v61 }
 0x526   :  { %v1018_v31 = vld [vmem:[#allocation3] sm:$0x3] }
 0x527   :  { %v1138_v3 = vrot.slane %v1018_v31, 6 }
 0x52c   :  { %v1802_v15 = vpop.eup %1801 }
 0x52d   :  { %v1013_v16 = vmul.f32 %v1802_v15, %v1800_v12 }
 0x52f   :  { %1015 = vst [vmem:[#allocation2] sm:$0x3] %v1013_v16  ;;  %1016 = vst [vmem:[#allocation4 + $0x8] sm:$0x3] %v1013_v16  ;;  %v1869_v16 = vld [vmem:[%s2609_s3 + $0xc8] ss:$16 sps:$4 sm:$0xff]  }
 0x536   :  { %v1017_v62 = vld [vmem:[#allocation2] sm:$0x3] }
 0x537   :  { %v1019_v0 = vpack.c.bf16 %v1017_v62, %v1017_v62  ;;  %v1870_v62 = vld [vmem:[%s2609_s3 + $0xac] ss:$16 sps:$4 sm:$0xff]  }
 0x539   :  { %1053 = vmatmul.mubr.bf16.vlgmr.msra.gmra.mxu0 %v1019_v0  ;;  %1094 = vmatmul.mubr.bf16.vlgmr.msra.gmra.mxu1 %v1019_v0  ;;  %v1872_v0 = vld [vmem:[%s2609_s3 + $0x8c] ss:$16 sps:$4 sm:$0xff]  }
 0x53a   :  { %1152 = vmatpush1.bf16.msra.mxu0 %v2376_v35  ;;  %1193 = vmatpush1.bf16.msra.mxu1 %v2382_v45 }
 0x53b   :  { %1153 = vmatprep.subr.bf16.mxu0 %v2388_v48  ;;  %1194 = vmatprep.subr.bf16.mxu1 %v2394_v37 }
 0x53c   :  { %1183 = vmatprep.mubr.bf16.mxu0 %v1883_v1  ;;  %1224 = vmatprep.mubr.bf16.mxu1 %v1883_v1 }
 0x53e   :  { %1154 = vmatpush1.bf16.msra.mxu0 %v2402_v46  ;;  %1195 = vmatpush1.bf16.msra.mxu1 %v2051_v26  ;;  %v2423_v26 = vld [vmem:[%s2609_s3 + $0x84] ss:$16 sps:$4 sm:$0xff]  }
 0x53f   :  { %1155 = vmatprep.subr.bf16.mxu0 %v2409_v53  ;;  %1196 = vmatprep.subr.bf16.mxu1 %v2063_v28  ;;  %v2430_v28 = vld [vmem:[%s2609_s3 + $0x80] ss:$16 sps:$4 sm:$0xff]  }
 0x542   :  { %1156 = vmatpush1.bf16.msra.mxu0 %v2416_v51  ;;  %1197 = vmatpush1.bf16.msra.mxu1 %v2074_v30  ;;  %v2437_v30 = vld [vmem:[%s2609_s3 + $0x64] ss:$16 sps:$4 sm:$0xff]  }
 0x543   :  { %1157 = vmatprep.subr.bf16.mxu0 %v2423_v26  ;;  %1198 = vmatprep.subr.bf16.mxu1 %v2088_v32  ;;  %v2444_v32 = vld [vmem:[%s2609_s3 + $0x60] ss:$16 sps:$4 sm:$0xff]  }
 0x546   :  { %1158 = vmatpush1.bf16.msra.mxu0 %v2430_v28  ;;  %1199 = vmatpush1.bf16.msra.mxu1 %v2100_v34  ;;  %v2451_v34 = vld [vmem:[%s2609_s3 + $0x44] ss:$16 sps:$4 sm:$0xff]  }
 0x547   :  { %1159 = vmatprep.subr.bf16.mxu0 %v2437_v30  ;;  %1200 = vmatprep.subr.bf16.mxu1 %v2107_v36  ;;  %v2458_v36 = vld [vmem:[%s2609_s3 + $0x40] ss:$16 sps:$4 sm:$0xff]  }
 0x54a   :  { %1160 = vmatpush1.bf16.msra.mxu0 %v2444_v32  ;;  %1201 = vmatpush1.bf16.msra.mxu1 %v2114_v38  ;;  %v2465_v38 = vld [vmem:[%s2609_s3 + $0x24] ss:$16 sps:$4 sm:$0xff]  }
 0x54b   :  { %1161 = vmatprep.subr.bf16.mxu0 %v2451_v34  ;;  %1202 = vmatprep.subr.bf16.mxu1 %v2120_v39  ;;  %v2472_v39 = vld [vmem:[%s2609_s3 + $0x20] ss:$16 sps:$4 sm:$0xff]  }
 0x54e   :  { %1162 = vmatpush1.bf16.msra.mxu0 %v2458_v36  ;;  %1203 = vmatpush1.bf16.msra.mxu1 %v2127_v40  ;;  %v2479_v40 = vld [vmem:[%s2609_s3 + $0x4] ss:$16 sps:$4 sm:$0xff]  }
 0x54f   :  { %1163 = vmatprep.subr.bf16.mxu0 %v2465_v38  ;;  %1204 = vmatprep.subr.bf16.mxu1 %v2134_v41  ;;  %v1868_v41 = vld [vmem:[%s2609_s3 + $0xec] ss:$16 sps:$4 sm:$0xff]  }
 0x552   :  { %1164 = vmatpush1.bf16.msra.mxu0 %v2472_v39  ;;  %1205 = vmatpush1.bf16.msra.mxu1 %v2142_v42 }
 0x553   :  { %1165 = vmatprep.subr.bf16.mxu0 %v2479_v40  ;;  %1206 = vmatprep.subr.bf16.mxu1 %v2149_v43 }
 0x556   :  { %1166 = vmatpush1.bf16.msra.mxu0 %v2095_v33  ;;  %1207 = vmatpush1.bf16.msra.mxu1 %v2156_v44 }
 0x557   :  { %1282 = vmatprep.subr.bf16.mxu0 %v2365_v5  ;;  %1323 = vmatprep.subr.bf16.mxu1 %v1868_v41 }
 0x5f9   :  { %v1054_v42 = vpop.f32.mrf.mxu0  ;;  %v1095_v49 = vpop.f32.mrf.mxu1 }
 0x5fa   :  { %v1106_v52 = vrot.slane %v1054_v42, 6  ;;  %v1108_v19 = vrot.slane %v1095_v49, 6 }
 0x5fb   :  { %v1056_v56 = vpop.f32.mrf.mxu0  ;;  %v1097_v7 = vpop.f32.mrf.mxu1 }
 0x5fc   :  { %v1114_v9 = vadd.f32 %v1106_v52, %v2193_v55  ;;  %v1107_v13 = vrot.slane %v1056_v56, 6  ;;  %v1116_v21 = vadd.f32 %v1108_v19, %v2197_v4  ;;  %v1109_v22 = vrot.slane %v1097_v7, 6 }
 0x5fd   :  { %v1058_v43 = vpop.f32.mrf.mxu0  ;;  %v1099_v14 = vpop.f32.mrf.mxu1 }
 0x5fe   :  { %v1603_v33 = vmul.f32 -1.442695, %v1114_v9  ;;  %v1115_v44 = vadd.f32 %v1107_v13, %v2195_v58  ;;  %v1605_v23 = vmul.f32 -1.442695, %v1116_v21  ;;  %v1117_v25 = vadd.f32 %v1109_v22, %v2199_v8 }
 0x5ff   :  { %v1059_v17 = vpop.f32.mrf.mxu0  ;;  %v1100_v5 = vpop.f32.mrf.mxu1 }
 0x600   :  { %1803 = vpow2.f32 %v1603_v33  ;;  %v1604_v18 = vmul.f32 -1.442695, %v1115_v44 }
 0x602   :  { %1805 = vpow2.f32 %v1604_v18 }
 0x603   :  { %1807 = vpow2.f32 %v1605_v23 }
 0x60d   :  { %v1804_v24 = vpop.eup %1803 }
 0x60e   :  { %v1127_v27 = vadd.f32 1.0, %v1804_v24 }
 0x60f   :  { %v1806_v29 = vpop.eup %1805 }
 0x610   :  { %1809 = vrcp.f32 %v1127_v27  ;;  %v1128_v20 = vadd.f32 1.0, %v1806_v29  ;;  %v1808_v57 = vpop.eup %1807 }
 0x611   :  { %1811 = vtanh.f32 %v1117_v25  ;;  %v1129_v50 = vadd.f32 1.0, %v1808_v57 }
 0x612   :  { %1813 = vrcp.f32 %v1128_v20 }
 0x613   :  { %1815 = vrcp.f32 %v1129_v50 }
 0x61d   :  { %v1810_v47 = vpop.eup %1809 }
 0x61e   :  { %v1812_v63 = vpop.eup %1811 }
 0x61f   :  { %v1814_v6 = vpop.eup %1813  ;;  %v1141_v54 = vmul.f32 %v1812_v63, %v1810_v47 }
 0x620   :  { %v1140_v11 = vmul.f32 %v1814_v6, %v1138_v3  ;;  %v1816_v10 = vpop.eup %1815 }
 0x622   :  { %v1142_v59 = vadd.f32 %v1141_v54, %v1140_v11 }
 0x624   :  { %1817 = vtanh.f32 %v1142_v59  ;;  %1145 = vst [vmem:[#allocation3 - $0x2] sm:$0xc] %v1142_v59  ;;  %v1715_v59 = vld [vmem:[%s2613_s5 + $0x38] sm:$0xff]  }
 0x62b   :  { %v1149_v23 = vld [vmem:[#allocation3] sm:$0x3] }
 0x62c   :  { %v1269_v29 = vrot.slane %v1149_v23, 4 }
 0x631   :  { %v1818_v60 = vpop.eup %1817 }
 0x632   :  { %v1144_v61 = vmul.f32 %v1818_v60, %v1816_v10  ;;  %v1716_v10 = vld [vmem:[%s2613_s5 + $0x30] sm:$0xff]   ;;  %v1717_v60 = vld [vmem:[%s2613_s5 + $0x28] sm:$0xff]  }
 0x634   :  { %1146 = vst [vmem:[#allocation2 - $0x2] sm:$0xc] %v1144_v61  ;;  %1147 = vst [vmem:[#allocation4 + $0x8] sm:$0xc] %v1144_v61  ;;  %v1718_v61 = vld [vmem:[%s2613_s5 + $0x20] sm:$0xff]  }
 0x63b   :  { %v1148_v12 = vld [vmem:[#allocation2] sm:$0x3] }
 0x63c   :  { %v1150_v15 = vpack.c.bf16 %v1148_v12, %v1148_v12  ;;  %v1719_v12 = vld [vmem:[%s2613_s5 + $0x18] sm:$0xff]  }
 0x63e   :  { %1184 = vmatmul.mubr.bf16.vlgmr.msra.gmra.mxu0 %v1150_v15  ;;  %1225 = vmatmul.mubr.bf16.vlgmr.msra.gmra.mxu1 %v1150_v15  ;;  %v1720_v15 = vld [vmem:[%s2613_s5 + $0x10] sm:$0xff]  }
 0x63f   :  { %1283 = vmatpush1.bf16.msra.mxu0 %v2376_v35  ;;  %1324 = vmatpush1.bf16.msra.mxu1 %v2382_v45  ;;  %v1873_v35 = vld [vmem:[%s2609_s3 + $0x88] ss:$16 sps:$4 sm:$0xff]   ;;  %v1874_v45 = vld [vmem:[%s2609_s3 + $0x6c] ss:$16 sps:$4 sm:$0xff]  }
 0x640   :  { %1284 = vmatprep.subr.bf16.mxu0 %v2388_v48  ;;  %1325 = vmatprep.subr.bf16.mxu1 %v2394_v37  ;;  %v1875_v48 = vld [vmem:[%s2609_s3 + $0x68] ss:$16 sps:$4 sm:$0xff]   ;;  %v1876_v37 = vld [vmem:[%s2609_s3 + $0x4c] ss:$16 sps:$4 sm:$0xff]  }
 0x641   :  { %1314 = vmatprep.mubr.bf16.mxu0 %v1883_v1  ;;  %1355 = vmatprep.mubr.bf16.mxu1 %v1883_v1  ;;  %v1871_v1 = vld [vmem:[%s2609_s3 + $0xa8] ss:$16 sps:$4 sm:$0xff]  }
 0x643   :  { %1285 = vmatpush1.bf16.msra.mxu0 %v2402_v46  ;;  %1326 = vmatpush1.bf16.msra.mxu1 %v1869_v16  ;;  %v1877_v46 = vld [vmem:[%s2609_s3 + $0x48] ss:$16 sps:$4 sm:$0xff]  }
 0x644   :  { %1286 = vmatprep.subr.bf16.mxu0 %v2409_v53  ;;  %1327 = vmatprep.subr.bf16.mxu1 %v1870_v62  ;;  %v1878_v53 = vld [vmem:[%s2609_s3 + $0x2c] ss:$16 sps:$4 sm:$0xff]   ;;  %v1722_v62 = vld [vmem:[%s2613_s5] sm:$0xff]  }
 0x645   :  { %v1721_v16 = vld [vmem:[%s2613_s5 + $0x8] sm:$0xff]  }
 0x647   :  { %1287 = vmatpush1.bf16.msra.mxu0 %v2416_v51  ;;  %1328 = vmatpush1.bf16.msra.mxu1 %v1871_v1  ;;  %v1879_v51 = vld [vmem:[%s2609_s3 + $0x28] ss:$16 sps:$4 sm:$0xff]  }
 0x648   :  { %1288 = vmatprep.subr.bf16.mxu0 %v2423_v26  ;;  %1329 = vmatprep.subr.bf16.mxu1 %v1872_v0  ;;  %v1880_v26 = vld [vmem:[%s2609_s3 + $0xc] ss:$16 sps:$4 sm:$0xff]  }
 0x64b   :  { %1289 = vmatpush1.bf16.msra.mxu0 %v2430_v28  ;;  %1330 = vmatpush1.bf16.msra.mxu1 %v1873_v35  ;;  %v1881_v28 = vld [vmem:[%s2609_s3] ss:$16 sps:$4 sm:$0xff]  }
 0x64c   :  { %1290 = vmatprep.subr.bf16.mxu0 %v2437_v30  ;;  %1331 = vmatprep.subr.bf16.mxu1 %v1874_v45  ;;  %v1882_v30 = vld [vmem:[%s2609_s3 + $0x8] ss:$16 sps:$4 sm:$0xff]  }
 0x64f   :  { %1291 = vmatpush1.bf16.msra.mxu0 %v2444_v32  ;;  %1332 = vmatpush1.bf16.msra.mxu1 %v1875_v48  ;;  %v1413_v32 = vld [vmem:[%s2612_s1 + $0x8] sm:$0xff] }
 0x650   :  { %1292 = vmatprep.subr.bf16.mxu0 %v2451_v34  ;;  %1333 = vmatprep.subr.bf16.mxu1 %v1876_v37 }
 0x651   :  { %1421 = vperm.xlu0 %1653, %v1413_v32  }
 0x653   :  { %1293 = vmatpush1.bf16.msra.mxu0 %v2458_v36  ;;  %1334 = vmatpush1.bf16.msra.mxu1 %v1877_v46 }
 0x654   :  { %1294 = vmatprep.subr.bf16.mxu0 %v2465_v38  ;;  %1335 = vmatprep.subr.bf16.mxu1 %v1878_v53 }
 0x657   :  { %1295 = vmatpush1.bf16.msra.mxu0 %v2472_v39  ;;  %1336 = vmatpush1.bf16.msra.mxu1 %v1879_v51 }
 0x658   :  { %1296 = vmatprep.subr.bf16.mxu0 %v2479_v40  ;;  %1337 = vmatprep.subr.bf16.mxu1 %v1880_v26 }
 0x65b   :  { %1297 = vmatpush1.bf16.msra.mxu0 %v1881_v28  ;;  %1338 = vmatpush1.bf16.msra.mxu1 %v1882_v30 }
 0x65c   :  { %1630 = vmatprep.subr.bf16.mxu0 %v1884_v2 }
 0x6fe   :  { %v1185_v34 = vpop.f32.mrf.mxu0  ;;  %v1226_v36 = vpop.f32.mrf.mxu1 }
 0x6ff   :  { %v1237_v38 = vrot.slane %v1185_v34, 4  ;;  %v1239_v14 = vrot.slane %v1226_v36, 4 }
 0x700   :  { %v1187_v39 = vpop.f32.mrf.mxu0  ;;  %v1228_v40 = vpop.f32.mrf.mxu1 }
 0x701   :  { %v1245_v41 = vadd.f32 %v1237_v38, %v2193_v55  ;;  %v1238_v42 = vrot.slane %v1187_v39, 4  ;;  %v1247_v33 = vadd.f32 %v1239_v14, %v2197_v4  ;;  %v1240_v44 = vrot.slane %v1228_v40, 4 }
 0x702   :  { %v1189_v49 = vpop.f32.mrf.mxu0  ;;  %v1230_v52 = vpop.f32.mrf.mxu1 }
 0x703   :  { %v1606_v56 = vmul.f32 -1.442695, %v1245_v41  ;;  %v1246_v7 = vadd.f32 %v1238_v42, %v2195_v58  ;;  %v1608_v17 = vmul.f32 -1.442695, %v1247_v33  ;;  %v1248_v18 = vadd.f32 %v1240_v44, %v2199_v8 }
 0x704   :  { %v1190_v9 = vpop.f32.mrf.mxu0  ;;  %v1231_v13 = vpop.f32.mrf.mxu1 }
 0x705   :  { %1819 = vpow2.f32 %v1606_v56  ;;  %v1607_v43 = vmul.f32 -1.442695, %v1246_v7 }
 0x707   :  { %1821 = vpow2.f32 %v1607_v43 }
 0x708   :  { %1823 = vpow2.f32 %v1608_v17 }
 0x712   :  { %v1820_v5 = vpop.eup %1819 }
 0x713   :  { %v1258_v19 = vadd.f32 1.0, %v1820_v5  ;;  %v1417_v5 = vpop.permute.xlu0 %1416 }
 0x714   :  { %v1822_v21 = vpop.eup %1821 }
 0x715   :  { %1825 = vrcp.f32 %v1258_v19  ;;  %v1259_v22 = vadd.f32 1.0, %v1822_v21  ;;  %v1824_v24 = vpop.eup %1823 }
 0x716   :  { %1827 = vtanh.f32 %v1248_v18  ;;  %v1260_v31 = vadd.f32 1.0, %v1824_v24  ;;  %v1410_v18 = vld [vmem:[#allocation4] sm:$0xff] }
 0x717   :  { %1829 = vrcp.f32 %v1259_v22  ;;  %v1422_v19 = vpop.permute.xlu0 %1421  ;;  %v1424_v22 = vmul.f32 %v1417_v5, %v1410_v18 }
 0x718   :  { %1831 = vrcp.f32 %v1260_v31 }
 0x722   :  { %v1826_v25 = vpop.eup %1825 }
 0x723   :  { %v1828_v27 = vpop.eup %1827 }
 0x724   :  { %v1830_v20 = vpop.eup %1829  ;;  %v1272_v47 = vmul.f32 %v1828_v27, %v1826_v25  ;;  %v1612_v25 = vld [vmem:[%s2614_s6] ss:$0 sm:$0xff] }
 0x725   :  { %v1271_v57 = vmul.f32 %v1830_v20, %v1269_v29  ;;  %v1832_v3 = vpop.eup %1831 }
 0x727   :  { %v1273_v63 = vadd.f32 %v1272_v47, %v1271_v57 }
 0x729   :  { %1833 = vtanh.f32 %v1273_v63  ;;  %1276 = vst [vmem:[#allocation3 - $0x4] sm:$0x30] %v1273_v63 }
 0x736   :  { %v1834_v6 = vpop.eup %1833 }
 0x737   :  { %v1275_v50 = vmul.f32 %v1834_v6, %v1832_v3 }
 0x739   :  { %1277 = vst [vmem:[#allocation2 - $0x4] sm:$0x30] %v1275_v50  ;;  %1278 = vst [vmem:[#allocation4 + $0x8] sm:$0x30] %v1275_v50 }
 0x740   :  { %v1279_v11 = vld [vmem:[#allocation2] sm:$0x3] }
 0x741   :  { %v1281_v54 = vpack.c.bf16 %v1279_v11, %v1279_v11 }
 0x743   :  { %1315 = vmatmul.mubr.bf16.vlgmr.msra.gmra.mxu0 %v1281_v54  ;;  %1356 = vmatmul.mubr.bf16.vlgmr.msra.gmra.mxu1 %v1281_v54 }
 0x744   :  { %1631 = vmatpush3.bf16.msra.mxu0 %v1715_v59  ;;  %1646 = vmatprep.mubr.msk.bf16.mxu0 %vm1885_vm1, %v1884_v2 }
 0x745   :  { %1632 = vmatprep.subr.bf16.mxu0 %v1884_v2 }
 0x748   :  { %1633 = vmatpush3.bf16.msra.mxu0 %v1716_v10 }
 0x749   :  { %1634 = vmatprep.subr.bf16.mxu0 %v1884_v2 }
 0x74c   :  { %1635 = vmatpush3.bf16.msra.mxu0 %v1717_v60 }
 0x74d   :  { %1636 = vmatprep.subr.bf16.mxu0 %v1884_v2 }
 0x750   :  { %1637 = vmatpush3.bf16.msra.mxu0 %v1718_v61 }
 0x751   :  { %1638 = vmatprep.subr.bf16.mxu0 %v1884_v2 }
 0x754   :  { %1639 = vmatpush3.bf16.msra.mxu0 %v1719_v12 }
 0x755   :  { %1640 = vmatprep.subr.bf16.mxu0 %v1884_v2 }
 0x758   :  { %1641 = vmatpush3.bf16.msra.mxu0 %v1720_v15 }
 0x759   :  { %1642 = vmatprep.subr.bf16.mxu0 %v1884_v2 }
 0x75c   :  { %1643 = vmatpush3.bf16.msra.mxu0 %v1721_v16 }
 0x75d   :  { %1644 = vmatprep.subr.bf16.mxu0 %v1884_v2 }
 0x760   :  { %1645 = vmatpush3.bf16.msra.mxu0 %v1722_v62 }
 0x803   :  { %v1316_v1 = vpop.f32.mrf.mxu0  ;;  %v1357_v0 = vpop.f32.mrf.mxu1 }
 0x804   :  { %v1368_v35 = vrot.slane %v1316_v1, 2  ;;  %v1370_v2 = vrot.slane %v1357_v0, 2 }
 0x805   :  { %v1318_v45 = vpop.f32.mrf.mxu0  ;;  %v1359_v48 = vpop.f32.mrf.mxu1 }
 0x806   :  { %v1376_v37 = vadd.f32 %v1368_v35, %v2193_v55  ;;  %v1369_v46 = vrot.slane %v1318_v45, 2  ;;  %v1378_v36 = vadd.f32 %v1370_v2, %v2197_v4  ;;  %v1371_v38 = vrot.slane %v1359_v48, 2 }
 0x807   :  { %v1320_v53 = vpop.f32.mrf.mxu0  ;;  %v1361_v51 = vpop.f32.mrf.mxu1 }
 0x808   :  { %v1609_v26 = vmul.f32 -1.442695, %v1376_v37  ;;  %v1377_v28 = vadd.f32 %v1369_v46, %v2195_v58  ;;  %v1611_v39 = vmul.f32 -1.442695, %v1378_v36  ;;  %v1379_v41 = vadd.f32 %v1371_v38, %v2199_v8  ;;  %v1280_v58 = vld [vmem:[#allocation3] sm:$0x3] }
 0x809   :  { %v1321_v30 = vpop.f32.mrf.mxu0  ;;  %v1362_v32 = vpop.f32.mrf.mxu1  ;;  %v1400_v9 = vrot.slane %v1280_v58, 2 }
 0x80a   :  { %1835 = vpow2.f32 %v1609_v26  ;;  %v1610_v34 = vmul.f32 -1.442695, %v1377_v28 }
 0x80c   :  { %1837 = vpow2.f32 %v1610_v34 }
 0x80d   :  { %1839 = vpow2.f32 %v1611_v39 }
 0x817   :  { %v1836_v40 = vpop.eup %1835 }
 0x818   :  { %v1389_v55 = vadd.f32 1.0, %v1836_v40 }
 0x819   :  { %v1838_v42 = vpop.eup %1837 }
 0x81a   :  { %1841 = vrcp.f32 %v1389_v55  ;;  %v1390_v49 = vadd.f32 1.0, %v1838_v42  ;;  %v1840_v52 = vpop.eup %1839 }
 0x81b   :  { %1843 = vtanh.f32 %v1379_v41  ;;  %v1391_v43 = vadd.f32 1.0, %v1840_v52 }
 0x81c   :  { %1845 = vrcp.f32 %v1390_v49 }
 0x81d   :  { %1847 = vrcp.f32 %v1391_v43 }
 0x827   :  { %v1842_v56 = vpop.eup %1841 }
 0x828   :  { %v1844_v7 = vpop.eup %1843 }
 0x829   :  { %v1846_v13 = vpop.eup %1845  ;;  %v1403_v14 = vmul.f32 %v1844_v7, %v1842_v56 }
 0x82a   :  { %v1402_v4 = vmul.f32 %v1846_v13, %v1400_v9  ;;  %v1848_v8 = vpop.eup %1847 }
 0x82c   :  { %v1404_v33 = vadd.f32 %v1403_v14, %v1402_v4 }
 0x82e   :  { %1849 = vtanh.f32 %v1404_v33  ;;  %1407 = vst [vmem:[#allocation3 - $0x6] sm:$0xc0] %v1404_v33 }
 0x83b   :  { %v1850_v44 = vpop.eup %1849 }
 0x83c   :  { %v1406_v17 = vmul.f32 %v1850_v44, %v1848_v8 }
 0x83e   :  { %1408 = vst [vmem:[#allocation2 - $0x6] sm:$0xc0] %v1406_v17  ;;  %1409 = vst [vmem:[#allocation4 + $0x8] sm:$0xc0] %v1406_v17 }
 0x845   :  { %v1411_v21 = vld [vmem:[#allocation4 + $0x8] sm:$0xff] }
 0x846   :  { %v1425_v23 = vmul.f32 %v1422_v19, %v1411_v21 }
 0x848   :  { %v1426_v24 = vpack.c.bf16 %v1425_v23, %v1424_v22 }
 0x84a   :  { %1647 = vmatmul.mubr.bf16.vlgmr.msra.gmra.mxu0 %v1426_v24 }
 0x90a   :  { %v1532_v27 = vpop.f32.mrf.mxu0 }
 0x90b   :  { %v1533_v29 = vadd.f32 %v1612_v25, %v1532_v27 }
 0x90c   :  { %v1648_v20 = vpop.f32.mrf.mxu0 }
 0x90d   :  { %1539 = vst.msk [vmem:[%s2615_s7] sm:$0xff] %vm142_vm0, %v1533_v29 }
 0x90e   :  { %v1535_v31 = vpop.f32.mrf.mxu0 }
 0x90f   :  { %v1536_v57 = vadd.f32 %v1612_v25, %v1535_v31 }
 0x910   :  { %v1649_v47 = vpop.f32.mrf.mxu0 }
 0x911   :  { %1540 = vst.msk [vmem:[%s2615_s7 + $0x8] sm:$0xff] %vm142_vm0, %v1536_v57 }

</bundles_post_ra>
